<compile_context>
chip_gen: v6e
topology: v6e:2x2x1
jax: 0.10.0
libtpu: 0.0.40
codegen_flags: <defaults>
</compile_context>

<pallas_src>
import jax
import jax.numpy as jnp
from jax.experimental import pallas as pl
from jax.experimental.pallas import tpu as pltpu

DIM_IN = 29
DIM_AUD = 64
WIN_SIZE = 16
NEG_SLOPE = 0.02


def _round_up(x, m):
    return (x + m - 1) // m * m


def _leaky(x):
    return jnp.where(x > 0, x, NEG_SLOPE * x)


def _make_kernel(tb, conv_cfg, fc_cfg):
    """conv_cfg: [(row0, cin, cout, lin)] * 4 ; fc_cfg: [(row0, in, out)] * 2.

    Activation slab row convention (both the input x slab and the scratch
    slabs): rows [0:cin] are the zero left pad, rows [(p+1)*cin:(p+2)*cin] are
    time position p.  Conv1d(k=3, stride=2, pad=1):
        y[o] = Wcat @ [h[2o-1]; h[2o]; h[2o+1]] + b
    and [h[2o-1]; h[2o]; h[2o+1]] == slab rows [2o*cin : (2o+3)*cin] (contiguous).
    """

    def conv_layer(in_ref, out_ref, w_ref, b_ref, row0, cin, cout, lin):
        lout = lin // 2
        k = 3 * cin
        w = w_ref[row0:row0 + cout, 0:k]                              # [cout, 3cin] bf16
        b = jnp.broadcast_to(b_ref[row0:row0 + cout, :], (cout, tb))  # hoisted bcast
        if out_ref is not None:
            # Left zero pad block for the *next* layer.
            out_ref[0:cout, :] = jnp.zeros((cout, tb), jnp.bfloat16)
        last = None
        for o in range(lout):
            col = in_ref[2 * o * cin:(2 * o + 3) * cin, :]            # aligned sublane slice
            acc = jnp.dot(w, col, preferred_element_type=jnp.float32)  # f32 MXU acc
            act = _leaky(acc + b).astype(jnp.bfloat16)                # f32 VPU, bf16 store
            if out_ref is not None:
                out_ref[(o + 1) * cout:(o + 2) * cout, :] = act
            else:
                last = act                                            # final conv (lout == 1)
        return last

    def kernel(x_ref, w_ref, b_ref, o_ref, slab_a, slab_b):
        c1, c2, c3, c4 = conv_cfg
        conv_layer(x_ref,  slab_a, w_ref, b_ref, *c1)   # -> slab_a[:(8+1)*32]
        conv_layer(slab_a, slab_b, w_ref, b_ref, *c2)   # -> slab_b[:(4+1)*32]
        conv_layer(slab_b, slab_a, w_ref, b_ref, *c3)   # -> slab_a[:(2+1)*64]
        h = conv_layer(slab_a, None, w_ref, b_ref, *c4)  # [64, TB]  (== .squeeze(-1))

        (r1, i1, o1), (r2, i2, o2) = fc_cfg
        w1 = w_ref[r1:r1 + o1, 0:i1]
        b1 = jnp.broadcast_to(b_ref[r1:r1 + o1, :], (o1, tb))
        h = _leaky(jnp.dot(w1, h, preferred_element_type=jnp.float32) + b1)
        h = h.astype(jnp.bfloat16)
        w2 = w_ref[r2:r2 + o2, 0:i2]
        b2 = jnp.broadcast_to(b_ref[r2:r2 + o2, :], (o2, tb))
        o_ref[...] = jnp.dot(w2, h, preferred_element_type=jnp.float32) + b2

    return kernel


def audionet_forward(x, params, win_size=WIN_SIZE, block_b=512):
    """x: [B, dim_in, win_size] (PyTorch NCW). Returns [B, dim_aud] float32."""
    half_w = win_size // 2
    xw = x[:, :, 8 - half_w: 8 + half_w]
    B, dim_in, W = xw.shape
    assert W == 16, "AudioNet's 4 stride-2 convs require a 16-sample window"

    # ---- batch tile: lane axis, multiple of 128, minimal tail padding --------
    block_b = max(128, _round_up(block_b, 128))
    nblk = -(-B // block_b)                       # number of grid steps
    tb = _round_up(-(-B // nblk), 128)            # per-step batch tile
    b_pad = nblk * tb

    # ---- pack weights: tap-merged, channel-major; 1 bf16 slab + 1 f32 bias ---
    cin_p = _round_up(dim_in, 16)                 # 29 -> 32 (bf16 sublane pack)
    w_blocks, b_blocks, conv_cfg, fc_cfg = [], [], [], []
    row, cin_cur, lin = 0, cin_p, W
    for (w, b) in params['conv']:                 # w: [Cout, Cin, 3] (OIH)
        cout, cin, _ = w.shape
        cout_p = _round_up(cout, 16)
        taps = [jnp.pad(w[:, :, k], ((0, cout_p - cout), (0, cin_cur - cin)))
                for k in range(3)]
        w_blocks.append(jnp.concatenate(taps, axis=1))          # [cout_p, 3*cin_cur]
        b_blocks.append(jnp.pad(b, (0, cout_p - cout)))
        conv_cfg.append((row, cin_cur, cout_p, lin))
        row, cin_cur, lin = row + cout_p, cout_p, lin // 2
    assert lin == 1, "conv stack must reduce the window to length 1"

    for (w, b) in params['fc']:                   # w: [out, in]  (y = W @ h)
        outf, inf = w.shape
        out_p = _round_up(outf, 16)
        w_blocks.append(jnp.pad(w, ((0, out_p - outf), (0, cin_cur - inf))))
        b_blocks.append(jnp.pad(b, (0, out_p - outf)))
        fc_cfg.append((row, cin_cur, out_p))
        row, cin_cur = row + out_p, out_p

    total_rows = row
    k_max = max(wb.shape[1] for wb in w_blocks)
    w_slab = jnp.concatenate(
        [jnp.pad(wb, ((0, 0), (0, k_max - wb.shape[1]))) for wb in w_blocks],
        axis=0).astype(jnp.bfloat16)                            # [total_rows, k_max]
    b_slab = jnp.concatenate(b_blocks).reshape(total_rows, 1).astype(jnp.float32)

    # ---- input slab: [(W+1)*Cin_p, B_pad] bf16, host-side zero left pad ------
    xt = jnp.transpose(xw, (2, 1, 0))                           # [W, Cin, B]
    xt = jnp.pad(xt, ((1, 0), (0, cin_p - dim_in), (0, b_pad - B)))
    x2d = xt.reshape((W + 1) * cin_p, b_pad).astype(jnp.bfloat16)

    dim_aud = params['fc'][1][0].shape[0]
    out_rows = fc_cfg[1][2]                                     # padded dim_aud rows

    # Scratch slab sizes (ping-pong): rows written by conv1/conv3 -> slab_a,
    # conv2 -> slab_b; the last conv returns a value.
    prod = [(cfg[3] // 2 + 1) * cfg[2] for cfg in conv_cfg]
    slab_a_rows = max(prod[0], prod[2])
    slab_b_rows = prod[1]

    kernel = _make_kernel(tb, conv_cfg, fc_cfg)
    out = pl.pallas_call(
        kernel,
        out_shape=jax.ShapeDtypeStruct((out_rows, b_pad), jnp.float32),
        grid=(nblk,),
        in_specs=[
            pl.BlockSpec(((W + 1) * cin_p, tb), lambda i: (0, i)),
            pl.BlockSpec(w_slab.shape, lambda i: (0, 0)),       # VMEM-resident weights
            pl.BlockSpec(b_slab.shape, lambda i: (0, 0)),       # VMEM-resident biases
        ],
        out_specs=pl.BlockSpec((out_rows, tb), lambda i: (0, i)),
        scratch_shapes=[
            pltpu.VMEM((slab_a_rows, tb), jnp.bfloat16),
            pltpu.VMEM((slab_b_rows, tb), jnp.bfloat16),
        ],
        compiler_params=pltpu.CompilerParams(
            dimension_semantics=("parallel",)),
    )(x2d, w_slab, b_slab)

    return out[:dim_aud, :B].T                                  # [B, dim_aud] f32


def audionet_ref(x, params, win_size=WIN_SIZE):
    """Pure-JAX f32 reference matching the PyTorch forward."""
    half_w = win_size // 2
    h = x[:, :, 8 - half_w: 8 + half_w]
    for (w, b) in params['conv']:
        h = jax.lax.conv_general_dilated(
            h, w, window_strides=(2,), padding=((1, 1),),
            dimension_numbers=('NCH', 'OIH', 'NCH'))
        h = h + b[None, :, None]
        h = jnp.where(h > 0, h, NEG_SLOPE * h)
    h = h[:, :, 0]
    (w1, b1), (w2, b2) = params['fc']
    h = h @ w1.T + b1
    h = jnp.where(h > 0, h, NEG_SLOPE * h)
    return h @ w2.T + b2


def init_params(key, dim_in=DIM_IN, dim_aud=DIM_AUD):
    conv_shapes = [(32, dim_in, 3), (32, 32, 3), (64, 32, 3), (64, 64, 3)]
    fc_shapes = [(64, 64), (dim_aud, 64)]
    keys = jax.random.split(key, 2 * (len(conv_shapes) + len(fc_shapes)))
    ki = iter(keys)
    conv = []
    for s in conv_shapes:
        w = 0.1 * jax.random.normal(next(ki), s, jnp.float32)
        b = 0.1 * jax.random.normal(next(ki), (s[0],), jnp.float32)
        conv.append((w, b))
    fc = []
    for s in fc_shapes:
        w = 0.1 * jax.random.normal(next(ki), s, jnp.float32)
        b = 0.1 * jax.random.normal(next(ki), (s[0],), jnp.float32)
        fc.append((w, b))
    return {'conv': conv, 'fc': fc}


if __name__ == "__main__":
    root = jax.random.PRNGKey(0)
    kp, kx = jax.random.split(root)
    params = init_params(kp)

    # Small case (single grid step, TB=128).
    B = 2
    x = jax.random.normal(kx, (B, DIM_IN, WIN_SIZE), jnp.float32)
    out = jax.block_until_ready(audionet_forward(x, params))
    ref = audionet_ref(x, params)
    assert out.shape == (B, DIM_AUD), out.shape
    max_err = float(jnp.max(jnp.abs(out - ref)))
    # bf16 operands / f32 accumulation: allow ~1% relative drift vs f32 reference.
    assert jnp.allclose(out, ref, atol=2e-2, rtol=2e-2), max_err

    # Multi-block case: exercises tail padding and a >1-step parallel grid.
    B2 = 200
    x2 = jax.random.normal(jax.random.fold_in(kx, 1), (B2, DIM_IN, WIN_SIZE),
                           jnp.float32)
    out2 = jax.block_until_ready(audionet_forward(x2, params, block_b=128))
    ref2 = audionet_ref(x2, params)
    assert out2.shape == (B2, DIM_AUD), out2.shape
    max_err2 = float(jnp.max(jnp.abs(out2 - ref2)))
    assert jnp.allclose(out2, ref2, atol=2e-2, rtol=2e-2), max_err2

    print("KERNEL_OK")
</pallas_src>

<mosaic_0001>
module attributes {stable_mosaic.version = 11 : i64} {
  func.func @kernel(%arg0: i32, %arg1: memref<544x128xbf16, #tpu.memory_space<vmem>>, %arg2: memref<320x192xbf16, #tpu.memory_space<vmem>>, %arg3: memref<320x1xf32, #tpu.memory_space<vmem>>, %arg4: memref<64x128xf32, #tpu.memory_space<vmem>>, %arg5: memref<288x128xbf16, #tpu.memory_space<vmem>>, %arg6: memref<160x128xbf16, #tpu.memory_space<vmem>>) attributes {dimension_semantics = [#tpu.dimension_semantics<parallel>], iteration_bounds = array<i64: 1>, scalar_prefetch = 0 : i64, scratch_operands = 2 : i64, tpu.core_type = #tpu.core_type<tc>, window_params = [{transform_indices = @transform_0, window_bounds = array<i64: 544, 128>}, {pipeline_mode = #tpu.pipeline_mode<synchronous>, transform_indices = @transform_1, window_bounds = array<i64: 320, 192>}, {pipeline_mode = #tpu.pipeline_mode<synchronous>, transform_indices = @transform_2, window_bounds = array<i64: 320, 1>}, {transform_indices = @transform_3, window_bounds = array<i64: 64, 128>}]} {
    %c0 = arith.constant 0 : index
    %c0_0 = arith.constant 0 : index
    %0 = vector.load %arg2[%c0, %c0_0] : memref<320x192xbf16, #tpu.memory_space<vmem>>, vector<32x96xbf16>
    %c0_1 = arith.constant 0 : index
    %c0_2 = arith.constant 0 : index
    %1 = vector.load %arg3[%c0_1, %c0_2] : memref<320x1xf32, #tpu.memory_space<vmem>>, vector<32x1xf32>
    %2 = vector.shape_cast %1 : vector<32x1xf32> to vector<32x1xf32>
    %3 = vector.broadcast %2 : vector<32x1xf32> to vector<32x128xf32>
    %cst = arith.constant 0.000000e+00 : bf16
    %4 = vector.broadcast %cst : bf16 to vector<32x128xbf16>
    %c0_3 = arith.constant 0 : index
    %c0_4 = arith.constant 0 : index
    %5 = vector.load %arg5[%c0_3, %c0_4] : memref<288x128xbf16, #tpu.memory_space<vmem>>, vector<32x128xbf16>
    tpu.vector_store %arg5[%c0_3, %c0_4], %4 {strides = array<i32>} : memref<288x128xbf16, #tpu.memory_space<vmem>>, vector<32x128xbf16>,
    %c0_5 = arith.constant 0 : index
    %c0_6 = arith.constant 0 : index
    %6 = vector.load %arg1[%c0_5, %c0_6] : memref<544x128xbf16, #tpu.memory_space<vmem>>, vector<96x128xbf16>
    %cst_7 = arith.constant dense<0.000000e+00> : vector<32x128xf32>
    %7 = tpu.matmul %0, %6, %cst_7 {dimension_numbers = #tpu.dot_dimension_numbers<[1], [0], [0], [1], [0, 0, 1, 1], [], []>} : vector<32x96xbf16>, vector<96x128xbf16>, vector<32x128xf32> -> vector<32x128xf32>
    %8 = arith.addf %7, %3 : vector<32x128xf32>
    %cst_8 = arith.constant 0.000000e+00 : f32
    %9 = vector.broadcast %cst_8 : f32 to vector<32x128xf32>
    %10 = arith.cmpf ogt, %8, %9 : vector<32x128xf32>
    %cst_9 = arith.constant 2.000000e-02 : f32
    %11 = vector.broadcast %cst_9 : f32 to vector<32x128xf32>
    %12 = arith.mulf %11, %8 : vector<32x128xf32>
    %13 = arith.select %10, %8, %12 : vector<32x128xi1>, vector<32x128xf32>
    %14 = arith.truncf %13 : vector<32x128xf32> to vector<32x128xbf16>
    %c32 = arith.constant 32 : index
    %c0_10 = arith.constant 0 : index
    %15 = vector.load %arg5[%c32, %c0_10] : memref<288x128xbf16, #tpu.memory_space<vmem>>, vector<32x128xbf16>
    tpu.vector_store %arg5[%c32, %c0_10], %14 {strides = array<i32>} : memref<288x128xbf16, #tpu.memory_space<vmem>>, vector<32x128xbf16>,
    %c64 = arith.constant 64 : index
    %c0_11 = arith.constant 0 : index
    %16 = vector.load %arg1[%c64, %c0_11] : memref<544x128xbf16, #tpu.memory_space<vmem>>, vector<96x128xbf16>
    %cst_12 = arith.constant dense<0.000000e+00> : vector<32x128xf32>
    %17 = tpu.matmul %0, %16, %cst_12 {dimension_numbers = #tpu.dot_dimension_numbers<[1], [0], [0], [1], [0, 0, 1, 1], [], []>} : vector<32x96xbf16>, vector<96x128xbf16>, vector<32x128xf32> -> vector<32x128xf32>
    %18 = arith.addf %17, %3 : vector<32x128xf32>
    %cst_13 = arith.constant 0.000000e+00 : f32
    %19 = vector.broadcast %cst_13 : f32 to vector<32x128xf32>
    %20 = arith.cmpf ogt, %18, %19 : vector<32x128xf32>
    %cst_14 = arith.constant 2.000000e-02 : f32
    %21 = vector.broadcast %cst_14 : f32 to vector<32x128xf32>
    %22 = arith.mulf %21, %18 : vector<32x128xf32>
    %23 = arith.select %20, %18, %22 : vector<32x128xi1>, vector<32x128xf32>
    %24 = arith.truncf %23 : vector<32x128xf32> to vector<32x128xbf16>
    %c64_15 = arith.constant 64 : index
    %c0_16 = arith.constant 0 : index
    %25 = vector.load %arg5[%c64_15, %c0_16] : memref<288x128xbf16, #tpu.memory_space<vmem>>, vector<32x128xbf16>
    tpu.vector_store %arg5[%c64_15, %c0_16], %24 {strides = array<i32>} : memref<288x128xbf16, #tpu.memory_space<vmem>>, vector<32x128xbf16>,
    %c128 = arith.constant 128 : index
    %c0_17 = arith.constant 0 : index
    %26 = vector.load %arg1[%c128, %c0_17] : memref<544x128xbf16, #tpu.memory_space<vmem>>, vector<96x128xbf16>
    %cst_18 = arith.constant dense<0.000000e+00> : vector<32x128xf32>
    %27 = tpu.matmul %0, %26, %cst_18 {dimension_numbers = #tpu.dot_dimension_numbers<[1], [0], [0], [1], [0, 0, 1, 1], [], []>} : vector<32x96xbf16>, vector<96x128xbf16>, vector<32x128xf32> -> vector<32x128xf32>
    %28 = arith.addf %27, %3 : vector<32x128xf32>
    %cst_19 = arith.constant 0.000000e+00 : f32
    %29 = vector.broadcast %cst_19 : f32 to vector<32x128xf32>
    %30 = arith.cmpf ogt, %28, %29 : vector<32x128xf32>
    %cst_20 = arith.constant 2.000000e-02 : f32
    %31 = vector.broadcast %cst_20 : f32 to vector<32x128xf32>
    %32 = arith.mulf %31, %28 : vector<32x128xf32>
    %33 = arith.select %30, %28, %32 : vector<32x128xi1>, vector<32x128xf32>
    %34 = arith.truncf %33 : vector<32x128xf32> to vector<32x128xbf16>
    %c96 = arith.constant 96 : index
    %c0_21 = arith.constant 0 : index
    %35 = vector.load %arg5[%c96, %c0_21] : memref<288x128xbf16, #tpu.memory_space<vmem>>, vector<32x128xbf16>
    tpu.vector_store %arg5[%c96, %c0_21], %34 {strides = array<i32>} : memref<288x128xbf16, #tpu.memory_space<vmem>>, vector<32x128xbf16>,
    %c192 = arith.constant 192 : index
    %c0_22 = arith.constant 0 : index
    %36 = vector.load %arg1[%c192, %c0_22] : memref<544x128xbf16, #tpu.memory_space<vmem>>, vector<96x128xbf16>
    %cst_23 = arith.constant dense<0.000000e+00> : vector<32x128xf32>
    %37 = tpu.matmul %0, %36, %cst_23 {dimension_numbers = #tpu.dot_dimension_numbers<[1], [0], [0], [1], [0, 0, 1, 1], [], []>} : vector<32x96xbf16>, vector<96x128xbf16>, vector<32x128xf32> -> vector<32x128xf32>
    %38 = arith.addf %37, %3 : vector<32x128xf32>
    %cst_24 = arith.constant 0.000000e+00 : f32
    %39 = vector.broadcast %cst_24 : f32 to vector<32x128xf32>
    %40 = arith.cmpf ogt, %38, %39 : vector<32x128xf32>
    %cst_25 = arith.constant 2.000000e-02 : f32
    %41 = vector.broadcast %cst_25 : f32 to vector<32x128xf32>
    %42 = arith.mulf %41, %38 : vector<32x128xf32>
    %43 = arith.select %40, %38, %42 : vector<32x128xi1>, vector<32x128xf32>
    %44 = arith.truncf %43 : vector<32x128xf32> to vector<32x128xbf16>
    %c128_26 = arith.constant 128 : index
    %c0_27 = arith.constant 0 : index
    %45 = vector.load %arg5[%c128_26, %c0_27] : memref<288x128xbf16, #tpu.memory_space<vmem>>, vector<32x128xbf16>
    tpu.vector_store %arg5[%c128_26, %c0_27], %44 {strides = array<i32>} : memref<288x128xbf16, #tpu.memory_space<vmem>>, vector<32x128xbf16>,
    %c256 = arith.constant 256 : index
    %c0_28 = arith.constant 0 : index
    %46 = vector.load %arg1[%c256, %c0_28] : memref<544x128xbf16, #tpu.memory_space<vmem>>, vector<96x128xbf16>
    %cst_29 = arith.constant dense<0.000000e+00> : vector<32x128xf32>
    %47 = tpu.matmul %0, %46, %cst_29 {dimension_numbers = #tpu.dot_dimension_numbers<[1], [0], [0], [1], [0, 0, 1, 1], [], []>} : vector<32x96xbf16>, vector<96x128xbf16>, vector<32x128xf32> -> vector<32x128xf32>
    %48 = arith.addf %47, %3 : vector<32x128xf32>
    %cst_30 = arith.constant 0.000000e+00 : f32
    %49 = vector.broadcast %cst_30 : f32 to vector<32x128xf32>
    %50 = arith.cmpf ogt, %48, %49 : vector<32x128xf32>
    %cst_31 = arith.constant 2.000000e-02 : f32
    %51 = vector.broadcast %cst_31 : f32 to vector<32x128xf32>
    %52 = arith.mulf %51, %48 : vector<32x128xf32>
    %53 = arith.select %50, %48, %52 : vector<32x128xi1>, vector<32x128xf32>
    %54 = arith.truncf %53 : vector<32x128xf32> to vector<32x128xbf16>
    %c160 = arith.constant 160 : index
    %c0_32 = arith.constant 0 : index
    %55 = vector.load %arg5[%c160, %c0_32] : memref<288x128xbf16, #tpu.memory_space<vmem>>, vector<32x128xbf16>
    tpu.vector_store %arg5[%c160, %c0_32], %54 {strides = array<i32>} : memref<288x128xbf16, #tpu.memory_space<vmem>>, vector<32x128xbf16>,
    %c320 = arith.constant 320 : index
    %c0_33 = arith.constant 0 : index
    %56 = vector.load %arg1[%c320, %c0_33] : memref<544x128xbf16, #tpu.memory_space<vmem>>, vector<96x128xbf16>
    %cst_34 = arith.constant dense<0.000000e+00> : vector<32x128xf32>
    %57 = tpu.matmul %0, %56, %cst_34 {dimension_numbers = #tpu.dot_dimension_numbers<[1], [0], [0], [1], [0, 0, 1, 1], [], []>} : vector<32x96xbf16>, vector<96x128xbf16>, vector<32x128xf32> -> vector<32x128xf32>
    %58 = arith.addf %57, %3 : vector<32x128xf32>
    %cst_35 = arith.constant 0.000000e+00 : f32
    %59 = vector.broadcast %cst_35 : f32 to vector<32x128xf32>
    %60 = arith.cmpf ogt, %58, %59 : vector<32x128xf32>
    %cst_36 = arith.constant 2.000000e-02 : f32
    %61 = vector.broadcast %cst_36 : f32 to vector<32x128xf32>
    %62 = arith.mulf %61, %58 : vector<32x128xf32>
    %63 = arith.select %60, %58, %62 : vector<32x128xi1>, vector<32x128xf32>
    %64 = arith.truncf %63 : vector<32x128xf32> to vector<32x128xbf16>
    %c192_37 = arith.constant 192 : index
    %c0_38 = arith.constant 0 : index
    %65 = vector.load %arg5[%c192_37, %c0_38] : memref<288x128xbf16, #tpu.memory_space<vmem>>, vector<32x128xbf16>
    tpu.vector_store %arg5[%c192_37, %c0_38], %64 {strides = array<i32>} : memref<288x128xbf16, #tpu.memory_space<vmem>>, vector<32x128xbf16>,
    %c384 = arith.constant 384 : index
    %c0_39 = arith.constant 0 : index
    %66 = vector.load %arg1[%c384, %c0_39] : memref<544x128xbf16, #tpu.memory_space<vmem>>, vector<96x128xbf16>
    %cst_40 = arith.constant dense<0.000000e+00> : vector<32x128xf32>
    %67 = tpu.matmul %0, %66, %cst_40 {dimension_numbers = #tpu.dot_dimension_numbers<[1], [0], [0], [1], [0, 0, 1, 1], [], []>} : vector<32x96xbf16>, vector<96x128xbf16>, vector<32x128xf32> -> vector<32x128xf32>
    %68 = arith.addf %67, %3 : vector<32x128xf32>
    %cst_41 = arith.constant 0.000000e+00 : f32
    %69 = vector.broadcast %cst_41 : f32 to vector<32x128xf32>
    %70 = arith.cmpf ogt, %68, %69 : vector<32x128xf32>
    %cst_42 = arith.constant 2.000000e-02 : f32
    %71 = vector.broadcast %cst_42 : f32 to vector<32x128xf32>
    %72 = arith.mulf %71, %68 : vector<32x128xf32>
    %73 = arith.select %70, %68, %72 : vector<32x128xi1>, vector<32x128xf32>
    %74 = arith.truncf %73 : vector<32x128xf32> to vector<32x128xbf16>
    %c224 = arith.constant 224 : index
    %c0_43 = arith.constant 0 : index
    %75 = vector.load %arg5[%c224, %c0_43] : memref<288x128xbf16, #tpu.memory_space<vmem>>, vector<32x128xbf16>
    tpu.vector_store %arg5[%c224, %c0_43], %74 {strides = array<i32>} : memref<288x128xbf16, #tpu.memory_space<vmem>>, vector<32x128xbf16>,
    %c448 = arith.constant 448 : index
    %c0_44 = arith.constant 0 : index
    %76 = vector.load %arg1[%c448, %c0_44] : memref<544x128xbf16, #tpu.memory_space<vmem>>, vector<96x128xbf16>
    %cst_45 = arith.constant dense<0.000000e+00> : vector<32x128xf32>
    %77 = tpu.matmul %0, %76, %cst_45 {dimension_numbers = #tpu.dot_dimension_numbers<[1], [0], [0], [1], [0, 0, 1, 1], [], []>} : vector<32x96xbf16>, vector<96x128xbf16>, vector<32x128xf32> -> vector<32x128xf32>
    %78 = arith.addf %77, %3 : vector<32x128xf32>
    %cst_46 = arith.constant 0.000000e+00 : f32
    %79 = vector.broadcast %cst_46 : f32 to vector<32x128xf32>
    %80 = arith.cmpf ogt, %78, %79 : vector<32x128xf32>
    %cst_47 = arith.constant 2.000000e-02 : f32
    %81 = vector.broadcast %cst_47 : f32 to vector<32x128xf32>
    %82 = arith.mulf %81, %78 : vector<32x128xf32>
    %83 = arith.select %80, %78, %82 : vector<32x128xi1>, vector<32x128xf32>
    %84 = arith.truncf %83 : vector<32x128xf32> to vector<32x128xbf16>
    %c256_48 = arith.constant 256 : index
    %c0_49 = arith.constant 0 : index
    %85 = vector.load %arg5[%c256_48, %c0_49] : memref<288x128xbf16, #tpu.memory_space<vmem>>, vector<32x128xbf16>
    tpu.vector_store %arg5[%c256_48, %c0_49], %84 {strides = array<i32>} : memref<288x128xbf16, #tpu.memory_space<vmem>>, vector<32x128xbf16>,
    %c32_50 = arith.constant 32 : index
    %c0_51 = arith.constant 0 : index
    %86 = vector.load %arg2[%c32_50, %c0_51] : memref<320x192xbf16, #tpu.memory_space<vmem>>, vector<32x96xbf16>
    %c32_52 = arith.constant 32 : index
    %c0_53 = arith.constant 0 : index
    %87 = vector.load %arg3[%c32_52, %c0_53] : memref<320x1xf32, #tpu.memory_space<vmem>>, vector<32x1xf32>
    %88 = vector.shape_cast %87 : vector<32x1xf32> to vector<32x1xf32>
    %89 = vector.broadcast %88 : vector<32x1xf32> to vector<32x128xf32>
    %cst_54 = arith.constant 0.000000e+00 : bf16
    %90 = vector.broadcast %cst_54 : bf16 to vector<32x128xbf16>
    %c0_55 = arith.constant 0 : index
    %c0_56 = arith.constant 0 : index
    %91 = vector.load %arg6[%c0_55, %c0_56] : memref<160x128xbf16, #tpu.memory_space<vmem>>, vector<32x128xbf16>
    tpu.vector_store %arg6[%c0_55, %c0_56], %90 {strides = array<i32>} : memref<160x128xbf16, #tpu.memory_space<vmem>>, vector<32x128xbf16>,
    %c0_57 = arith.constant 0 : index
    %c0_58 = arith.constant 0 : index
    %92 = vector.load %arg5[%c0_57, %c0_58] : memref<288x128xbf16, #tpu.memory_space<vmem>>, vector<96x128xbf16>
    %cst_59 = arith.constant dense<0.000000e+00> : vector<32x128xf32>
    %93 = tpu.matmul %86, %92, %cst_59 {dimension_numbers = #tpu.dot_dimension_numbers<[1], [0], [0], [1], [0, 0, 1, 1], [], []>} : vector<32x96xbf16>, vector<96x128xbf16>, vector<32x128xf32> -> vector<32x128xf32>
    %94 = arith.addf %93, %89 : vector<32x128xf32>
    %cst_60 = arith.constant 0.000000e+00 : f32
    %95 = vector.broadcast %cst_60 : f32 to vector<32x128xf32>
    %96 = arith.cmpf ogt, %94, %95 : vector<32x128xf32>
    %cst_61 = arith.constant 2.000000e-02 : f32
    %97 = vector.broadcast %cst_61 : f32 to vector<32x128xf32>
    %98 = arith.mulf %97, %94 : vector<32x128xf32>
    %99 = arith.select %96, %94, %98 : vector<32x128xi1>, vector<32x128xf32>
    %100 = arith.truncf %99 : vector<32x128xf32> to vector<32x128xbf16>
    %c32_62 = arith.constant 32 : index
    %c0_63 = arith.constant 0 : index
    %101 = vector.load %arg6[%c32_62, %c0_63] : memref<160x128xbf16, #tpu.memory_space<vmem>>, vector<32x128xbf16>
    tpu.vector_store %arg6[%c32_62, %c0_63], %100 {strides = array<i32>} : memref<160x128xbf16, #tpu.memory_space<vmem>>, vector<32x128xbf16>,
    %c64_64 = arith.constant 64 : index
    %c0_65 = arith.constant 0 : index
    %102 = vector.load %arg5[%c64_64, %c0_65] : memref<288x128xbf16, #tpu.memory_space<vmem>>, vector<96x128xbf16>
    %cst_66 = arith.constant dense<0.000000e+00> : vector<32x128xf32>
    %103 = tpu.matmul %86, %102, %cst_66 {dimension_numbers = #tpu.dot_dimension_numbers<[1], [0], [0], [1], [0, 0, 1, 1], [], []>} : vector<32x96xbf16>, vector<96x128xbf16>, vector<32x128xf32> -> vector<32x128xf32>
    %104 = arith.addf %103, %89 : vector<32x128xf32>
    %cst_67 = arith.constant 0.000000e+00 : f32
    %105 = vector.broadcast %cst_67 : f32 to vector<32x128xf32>
    %106 = arith.cmpf ogt, %104, %105 : vector<32x128xf32>
    %cst_68 = arith.constant 2.000000e-02 : f32
    %107 = vector.broadcast %cst_68 : f32 to vector<32x128xf32>
    %108 = arith.mulf %107, %104 : vector<32x128xf32>
    %109 = arith.select %106, %104, %108 : vector<32x128xi1>, vector<32x128xf32>
    %110 = arith.truncf %109 : vector<32x128xf32> to vector<32x128xbf16>
    %c64_69 = arith.constant 64 : index
    %c0_70 = arith.constant 0 : index
    %111 = vector.load %arg6[%c64_69, %c0_70] : memref<160x128xbf16, #tpu.memory_space<vmem>>, vector<32x128xbf16>
    tpu.vector_store %arg6[%c64_69, %c0_70], %110 {strides = array<i32>} : memref<160x128xbf16, #tpu.memory_space<vmem>>, vector<32x128xbf16>,
    %c128_71 = arith.constant 128 : index
    %c0_72 = arith.constant 0 : index
    %112 = vector.load %arg5[%c128_71, %c0_72] : memref<288x128xbf16, #tpu.memory_space<vmem>>, vector<96x128xbf16>
    %cst_73 = arith.constant dense<0.000000e+00> : vector<32x128xf32>
    %113 = tpu.matmul %86, %112, %cst_73 {dimension_numbers = #tpu.dot_dimension_numbers<[1], [0], [0], [1], [0, 0, 1, 1], [], []>} : vector<32x96xbf16>, vector<96x128xbf16>, vector<32x128xf32> -> vector<32x128xf32>
    %114 = arith.addf %113, %89 : vector<32x128xf32>
    %cst_74 = arith.constant 0.000000e+00 : f32
    %115 = vector.broadcast %cst_74 : f32 to vector<32x128xf32>
    %116 = arith.cmpf ogt, %114, %115 : vector<32x128xf32>
    %cst_75 = arith.constant 2.000000e-02 : f32
    %117 = vector.broadcast %cst_75 : f32 to vector<32x128xf32>
    %118 = arith.mulf %117, %114 : vector<32x128xf32>
    %119 = arith.select %116, %114, %118 : vector<32x128xi1>, vector<32x128xf32>
    %120 = arith.truncf %119 : vector<32x128xf32> to vector<32x128xbf16>
    %c96_76 = arith.constant 96 : index
    %c0_77 = arith.constant 0 : index
    %121 = vector.load %arg6[%c96_76, %c0_77] : memref<160x128xbf16, #tpu.memory_space<vmem>>, vector<32x128xbf16>
    tpu.vector_store %arg6[%c96_76, %c0_77], %120 {strides = array<i32>} : memref<160x128xbf16, #tpu.memory_space<vmem>>, vector<32x128xbf16>,
    %c192_78 = arith.constant 192 : index
    %c0_79 = arith.constant 0 : index
    %122 = vector.load %arg5[%c192_78, %c0_79] : memref<288x128xbf16, #tpu.memory_space<vmem>>, vector<96x128xbf16>
    %cst_80 = arith.constant dense<0.000000e+00> : vector<32x128xf32>
    %123 = tpu.matmul %86, %122, %cst_80 {dimension_numbers = #tpu.dot_dimension_numbers<[1], [0], [0], [1], [0, 0, 1, 1], [], []>} : vector<32x96xbf16>, vector<96x128xbf16>, vector<32x128xf32> -> vector<32x128xf32>
    %124 = arith.addf %123, %89 : vector<32x128xf32>
    %cst_81 = arith.constant 0.000000e+00 : f32
    %125 = vector.broadcast %cst_81 : f32 to vector<32x128xf32>
    %126 = arith.cmpf ogt, %124, %125 : vector<32x128xf32>
    %cst_82 = arith.constant 2.000000e-02 : f32
    %127 = vector.broadcast %cst_82 : f32 to vector<32x128xf32>
    %128 = arith.mulf %127, %124 : vector<32x128xf32>
    %129 = arith.select %126, %124, %128 : vector<32x128xi1>, vector<32x128xf32>
    %130 = arith.truncf %129 : vector<32x128xf32> to vector<32x128xbf16>
    %c128_83 = arith.constant 128 : index
    %c0_84 = arith.constant 0 : index
    %131 = vector.load %arg6[%c128_83, %c0_84] : memref<160x128xbf16, #tpu.memory_space<vmem>>, vector<32x128xbf16>
    tpu.vector_store %arg6[%c128_83, %c0_84], %130 {strides = array<i32>} : memref<160x128xbf16, #tpu.memory_space<vmem>>, vector<32x128xbf16>,
    %c64_85 = arith.constant 64 : index
    %c0_86 = arith.constant 0 : index
    %132 = vector.load %arg2[%c64_85, %c0_86] : memref<320x192xbf16, #tpu.memory_space<vmem>>, vector<64x96xbf16>
    %c64_87 = arith.constant 64 : index
    %c0_88 = arith.constant 0 : index
    %133 = vector.load %arg3[%c64_87, %c0_88] : memref<320x1xf32, #tpu.memory_space<vmem>>, vector<64x1xf32>
    %134 = vector.shape_cast %133 : vector<64x1xf32> to vector<64x1xf32>
    %135 = vector.broadcast %134 : vector<64x1xf32> to vector<64x128xf32>
    %cst_89 = arith.constant 0.000000e+00 : bf16
    %136 = vector.broadcast %cst_89 : bf16 to vector<64x128xbf16>
    %c0_90 = arith.constant 0 : index
    %c0_91 = arith.constant 0 : index
    %137 = vector.load %arg5[%c0_90, %c0_91] : memref<288x128xbf16, #tpu.memory_space<vmem>>, vector<64x128xbf16>
    tpu.vector_store %arg5[%c0_90, %c0_91], %136 {strides = array<i32>} : memref<288x128xbf16, #tpu.memory_space<vmem>>, vector<64x128xbf16>,
    %c0_92 = arith.constant 0 : index
    %c0_93 = arith.constant 0 : index
    %138 = vector.load %arg6[%c0_92, %c0_93] : memref<160x128xbf16, #tpu.memory_space<vmem>>, vector<96x128xbf16>
    %cst_94 = arith.constant dense<0.000000e+00> : vector<64x128xf32>
    %139 = tpu.matmul %132, %138, %cst_94 {dimension_numbers = #tpu.dot_dimension_numbers<[1], [0], [0], [1], [0, 0, 1, 1], [], []>} : vector<64x96xbf16>, vector<96x128xbf16>, vector<64x128xf32> -> vector<64x128xf32>
    %140 = arith.addf %139, %135 : vector<64x128xf32>
    %cst_95 = arith.constant 0.000000e+00 : f32
    %141 = vector.broadcast %cst_95 : f32 to vector<64x128xf32>
    %142 = arith.cmpf ogt, %140, %141 : vector<64x128xf32>
    %cst_96 = arith.constant 2.000000e-02 : f32
    %143 = vector.broadcast %cst_96 : f32 to vector<64x128xf32>
    %144 = arith.mulf %143, %140 : vector<64x128xf32>
    %145 = arith.select %142, %140, %144 : vector<64x128xi1>, vector<64x128xf32>
    %146 = arith.truncf %145 : vector<64x128xf32> to vector<64x128xbf16>
    %c64_97 = arith.constant 64 : index
    %c0_98 = arith.constant 0 : index
    %147 = vector.load %arg5[%c64_97, %c0_98] : memref<288x128xbf16, #tpu.memory_space<vmem>>, vector<64x128xbf16>
    tpu.vector_store %arg5[%c64_97, %c0_98], %146 {strides = array<i32>} : memref<288x128xbf16, #tpu.memory_space<vmem>>, vector<64x128xbf16>,
    %c64_99 = arith.constant 64 : index
    %c0_100 = arith.constant 0 : index
    %148 = vector.load %arg6[%c64_99, %c0_100] : memref<160x128xbf16, #tpu.memory_space<vmem>>, vector<96x128xbf16>
    %cst_101 = arith.constant dense<0.000000e+00> : vector<64x128xf32>
    %149 = tpu.matmul %132, %148, %cst_101 {dimension_numbers = #tpu.dot_dimension_numbers<[1], [0], [0], [1], [0, 0, 1, 1], [], []>} : vector<64x96xbf16>, vector<96x128xbf16>, vector<64x128xf32> -> vector<64x128xf32>
    %150 = arith.addf %149, %135 : vector<64x128xf32>
    %cst_102 = arith.constant 0.000000e+00 : f32
    %151 = vector.broadcast %cst_102 : f32 to vector<64x128xf32>
    %152 = arith.cmpf ogt, %150, %151 : vector<64x128xf32>
    %cst_103 = arith.constant 2.000000e-02 : f32
    %153 = vector.broadcast %cst_103 : f32 to vector<64x128xf32>
    %154 = arith.mulf %153, %150 : vector<64x128xf32>
    %155 = arith.select %152, %150, %154 : vector<64x128xi1>, vector<64x128xf32>
    %156 = arith.truncf %155 : vector<64x128xf32> to vector<64x128xbf16>
    %c128_104 = arith.constant 128 : index
    %c0_105 = arith.constant 0 : index
    %157 = vector.load %arg5[%c128_104, %c0_105] : memref<288x128xbf16, #tpu.memory_space<vmem>>, vector<64x128xbf16>
    tpu.vector_store %arg5[%c128_104, %c0_105], %156 {strides = array<i32>} : memref<288x128xbf16, #tpu.memory_space<vmem>>, vector<64x128xbf16>,
    %c128_106 = arith.constant 128 : index
    %c0_107 = arith.constant 0 : index
    %158 = vector.load %arg2[%c128_106, %c0_107] : memref<320x192xbf16, #tpu.memory_space<vmem>>, vector<64x192xbf16>
    %c128_108 = arith.constant 128 : index
    %c0_109 = arith.constant 0 : index
    %159 = vector.load %arg3[%c128_108, %c0_109] : memref<320x1xf32, #tpu.memory_space<vmem>>, vector<64x1xf32>
    %160 = vector.shape_cast %159 : vector<64x1xf32> to vector<64x1xf32>
    %161 = vector.broadcast %160 : vector<64x1xf32> to vector<64x128xf32>
    %c0_110 = arith.constant 0 : index
    %c0_111 = arith.constant 0 : index
    %162 = vector.load %arg5[%c0_110, %c0_111] : memref<288x128xbf16, #tpu.memory_space<vmem>>, vector<192x128xbf16>
    %cst_112 = arith.constant dense<0.000000e+00> : vector<64x128xf32>
    %163 = tpu.matmul %158, %162, %cst_112 {dimension_numbers = #tpu.dot_dimension_numbers<[1], [0], [0], [1], [0, 0, 1, 1], [], []>} : vector<64x192xbf16>, vector<192x128xbf16>, vector<64x128xf32> -> vector<64x128xf32>
    %164 = arith.addf %163, %161 : vector<64x128xf32>
    %cst_113 = arith.constant 0.000000e+00 : f32
    %165 = vector.broadcast %cst_113 : f32 to vector<64x128xf32>
    %166 = arith.cmpf ogt, %164, %165 : vector<64x128xf32>
    %cst_114 = arith.constant 2.000000e-02 : f32
    %167 = vector.broadcast %cst_114 : f32 to vector<64x128xf32>
    %168 = arith.mulf %167, %164 : vector<64x128xf32>
    %169 = arith.select %166, %164, %168 : vector<64x128xi1>, vector<64x128xf32>
    %170 = arith.truncf %169 : vector<64x128xf32> to vector<64x128xbf16>
    %c192_115 = arith.constant 192 : index
    %c0_116 = arith.constant 0 : index
    %171 = vector.load %arg2[%c192_115, %c0_116] : memref<320x192xbf16, #tpu.memory_space<vmem>>, vector<64x64xbf16>
    %c192_117 = arith.constant 192 : index
    %c0_118 = arith.constant 0 : index
    %172 = vector.load %arg3[%c192_117, %c0_118] : memref<320x1xf32, #tpu.memory_space<vmem>>, vector<64x1xf32>
    %173 = vector.shape_cast %172 : vector<64x1xf32> to vector<64x1xf32>
    %174 = vector.broadcast %173 : vector<64x1xf32> to vector<64x128xf32>
    %cst_119 = arith.constant dense<0.000000e+00> : vector<64x128xf32>
    %175 = tpu.matmul %171, %170, %cst_119 {dimension_numbers = #tpu.dot_dimension_numbers<[1], [0], [0], [1], [0, 0, 1, 1], [], []>} : vector<64x64xbf16>, vector<64x128xbf16>, vector<64x128xf32> -> vector<64x128xf32>
    %176 = arith.addf %175, %174 : vector<64x128xf32>
    %cst_120 = arith.constant 0.000000e+00 : f32
    %177 = vector.broadcast %cst_120 : f32 to vector<64x128xf32>
    %178 = arith.cmpf ogt, %176, %177 : vector<64x128xf32>
    %cst_121 = arith.constant 2.000000e-02 : f32
    %179 = vector.broadcast %cst_121 : f32 to vector<64x128xf32>
    %180 = arith.mulf %179, %176 : vector<64x128xf32>
    %181 = arith.select %178, %176, %180 : vector<64x128xi1>, vector<64x128xf32>
    %182 = arith.truncf %181 : vector<64x128xf32> to vector<64x128xbf16>
    %c256_122 = arith.constant 256 : index
    %c0_123 = arith.constant 0 : index
    %183 = vector.load %arg2[%c256_122, %c0_123] : memref<320x192xbf16, #tpu.memory_space<vmem>>, vector<64x64xbf16>
    %c256_124 = arith.constant 256 : index
    %c0_125 = arith.constant 0 : index
    %184 = vector.load %arg3[%c256_124, %c0_125] : memref<320x1xf32, #tpu.memory_space<vmem>>, vector<64x1xf32>
    %185 = vector.shape_cast %184 : vector<64x1xf32> to vector<64x1xf32>
    %186 = vector.broadcast %185 : vector<64x1xf32> to vector<64x128xf32>
    %cst_126 = arith.constant dense<0.000000e+00> : vector<64x128xf32>
    %187 = tpu.matmul %183, %182, %cst_126 {dimension_numbers = #tpu.dot_dimension_numbers<[1], [0], [0], [1], [0, 0, 1, 1], [], []>} : vector<64x64xbf16>, vector<64x128xbf16>, vector<64x128xf32> -> vector<64x128xf32>
    %188 = arith.addf %187, %186 : vector<64x128xf32>
    %c0_127 = arith.constant 0 : index
    %c0_128 = arith.constant 0 : index
    %189 = vector.load %arg4[%c0_127, %c0_128] : memref<64x128xf32, #tpu.memory_space<vmem>>, vector<64x128xf32>
    tpu.vector_store %arg4[%c0_127, %c0_128], %188 {strides = array<i32>} : memref<64x128xf32, #tpu.memory_space<vmem>>, vector<64x128xf32>,
    return
  }
  func.func @transform_0(%arg0: i32) -> (i32, i32) {
    %c0_i32 = arith.constant 0 : i32
    %c0_i32_0 = arith.constant 0 : i32
    return %c0_i32, %arg0 : i32, i32
  }
  func.func @transform_1(%arg0: i32) -> (i32, i32) {
    %c0_i32 = arith.constant 0 : i32
    %c0_i32_0 = arith.constant 0 : i32
    %c0_i32_1 = arith.constant 0 : i32
    return %c0_i32, %c0_i32_0 : i32, i32
  }
  func.func @transform_2(%arg0: i32) -> (i32, i32) {
    %c0_i32 = arith.constant 0 : i32
    %c0_i32_0 = arith.constant 0 : i32
    %c0_i32_1 = arith.constant 0 : i32
    return %c0_i32, %c0_i32_0 : i32, i32
  }
  func.func @transform_3(%arg0: i32) -> (i32, i32) {
    %c0_i32 = arith.constant 0 : i32
    %c0_i32_0 = arith.constant 0 : i32
    return %c0_i32, %arg0 : i32, i32
  }
}

</mosaic_0001>

<bundles_post_ra>
// kernel: tpu_custom_call.1
= control target key start
LH: loop header
LB: loop body
LE: loop exit
PB: predicated region body
PF: predicated region fallthrough
CT: control target
= control target key end

     0   :  { %v3803_v2 = vmov 0   ;;  %vm106_vm0 = vcmask 785408   ;;  %s4384_s0 = inlined_call_operand.vmem [shape: bf16[544,128], index: 0, kind: input, shape index: {}]   ;;  %s4385_s1 = inlined_call_operand.vmem [shape: bf16[320,192], index: 1, kind: input, shape index: {}]   ;;  %s4386_s2 = inlined_call_operand.vmem [shape: f32[320,1], index: 2, kind: input, shape index: {}]   ;;  %s4387_s3 = inlined_call_operand.hbm [shape: f32[64,128], index: 3, kind: output, shape index: {}]  }
   0x1   :  { %v3657_v0 = vld [vmem:[%s4384_s0 + $0x28] sm:$0xff]   ;;  %v3658_v1 = vld [vmem:[%s4384_s0 + $0x20] sm:$0xff]   ;;  %3655 = vset.pattern.permute.xlu0 %v3803_v2  ;;  %44 = vst [vmem:[#allocation2] sm:$0xf] %v3803_v2  ;;  %45 = vst [vmem:[#allocation2 + $0x4] sm:$0xf] %v3803_v2  ;;  %3656 = vset.pattern.permute.xlu1 %v3803_v2 }
   0x2   :  { %3379 = vmatprep.subr.bf16.mxu1 %v3657_v0  ;;  %46 = vst [vmem:[#allocation2 + $0x8] sm:$0xf] %v3803_v2  ;;  %47 = vst [vmem:[#allocation2 + $0xc] sm:$0xf] %v3803_v2  ;;  %v3660_v3 = vld [vmem:[%s4384_s0 + $0x68] sm:$0xff]   ;;  %v3659_v4 = vld [vmem:[%s4384_s0 + $0x18] sm:$0xff]  }
   0x3   :  { %1125 = vst [vmem:[#allocation3] sm:$0xf] %v3803_v2  ;;  %1126 = vst [vmem:[#allocation3 + $0x4] sm:$0xf] %v3803_v2  ;;  %3380 = vmatpush3.bf16.msra.mxu1 %v3657_v0  ;;  %3411 = vmatprep.subr.bf16.mxu0 %v3660_v3  ;;  %v3662_v5 = vld [vmem:[%s4384_s0 + $0x60] sm:$0xff]   ;;  %v3664_v6 = vld [vmem:[%s4384_s0 + $0x58] sm:$0xff]  }
   0x4   :  { %1127 = vst [vmem:[#allocation3 + $0x8] sm:$0xf] %v3803_v2  ;;  %1128 = vst [vmem:[#allocation3 + $0xc] sm:$0xf] %v3803_v2  ;;  %3381 = vmatprep.subr.bf16.mxu1 %v3658_v1  ;;  %3412 = vmatpush3.bf16.msra.mxu0 %v3660_v3  ;;  %v3661_v7 = vld [vmem:[%s4384_s0 + $0x10] sm:$0xff]   ;;  %v3663_v10 = vld [vmem:[%s4384_s0 + $0x8] sm:$0xff]  }
   0x5   :  { %3413 = vmatprep.subr.bf16.mxu0 %v3662_v5  ;;  %v3861_v8 = vld [vmem:[%s4385_s1] ss:$8 sps:$4 sm:$0xff]   ;;  %v3666_v9 = vld [vmem:[%s4384_s0 + $0x50] sm:$0xff]   ;;  %v3673_v19 = vld [vmem:[%s4384_s0 + $0x38] sm:$0xff]  }
   0x6   :  { %3391 = vmatprep.mubr.msk.bf16.mxu1 %vm106_vm0, %v3861_v8  ;;  %3423 = vmatprep.mubr.msk.bf16.mxu0 %vm106_vm0, %v3861_v8  ;;  %v3670_v11 = vld [vmem:[%s4384_s0 + $0x48] sm:$0xff]   ;;  %v3665_v12 = vld [vmem:[%s4384_s0] sm:$0xff]   ;;  %v3888_v15 = vld [vmem:[%s4385_s1 + $0x10] ss:$8 sps:$4 sm:$0xff]  }
   0x7   :  { %3382 = vmatpush3.bf16.msra.mxu1 %v3658_v1  ;;  %v3672_v13 = vld [vmem:[%s4384_s0 + $0x40] sm:$0xff]   ;;  %v3669_v14 = vld [vmem:[%s4384_s0 + $0x48] sm:$0xff]   ;;  %v3678_v20 = vld [vmem:[%s4384_s0 + $0x98] sm:$0xff]  }
   0x8   :  { %3383 = vmatprep.subr.bf16.mxu1 %v3659_v4  ;;  %3414 = vmatpush3.bf16.msra.mxu0 %v3662_v5  ;;  %v3674_v16 = vld [vmem:[%s4384_s0 + $0xa8] sm:$0xff]   ;;  %v3671_v17 = vld [vmem:[%s4384_s0 + $0x40] sm:$0xff]   ;;  %v3675_v21 = vld [vmem:[%s4384_s0 + $0x30] sm:$0xff]  }
   0x9   :  { %3415 = vmatprep.subr.bf16.mxu0 %v3664_v6  ;;  %v3676_v18 = vld [vmem:[%s4384_s0 + $0xa0] sm:$0xff]   ;;  %v3680_v22 = vld [vmem:[%s4384_s0 + $0x90] sm:$0xff]   ;;  %v3677_v23 = vld [vmem:[%s4384_s0 + $0x28] sm:$0xff]  }
   0xa   :  { %v3682_v24 = vld [vmem:[%s4384_s0 + $0x88] sm:$0xff]   ;;  %v3679_v25 = vld [vmem:[%s4384_s0 + $0x20] sm:$0xff]   ;;  %v22_v26 = vld [vmem:[%s4386_s2 + $0x10] sm:$0xff] }
   0xb   :  { %3384 = vmatpush3.bf16.msra.mxu1 %v3659_v4  ;;  %v3684_v27 = vld [vmem:[%s4384_s0 + $0x80] sm:$0xff]   ;;  %36 = vperm.xlu0 %3655, %v22_v26   ;;  %v23_v29 = vld [vmem:[%s4386_s2 + $0x18] sm:$0xff]  ;;  %v3681_v30 = vld [vmem:[%s4384_s0 + $0x88] sm:$0xff]  }
   0xc   :  { %3385 = vmatprep.subr.bf16.mxu1 %v3661_v7  ;;  %3416 = vmatpush3.bf16.msra.mxu0 %v3664_v6  ;;  %v20_v28 = vld [vmem:[%s4386_s2] sm:$0xff]  ;;  %v21_v31 = vld [vmem:[%s4386_s2 + $0x8] sm:$0xff]  ;;  %v1103_v34 = vld [vmem:[%s4386_s2 + $0x30] sm:$0xff] }
   0xd   :  { %3417 = vmatprep.subr.bf16.mxu0 %v3666_v9  ;;  %26 = vperm.xlu1 %3656, %v20_v28   ;;  %v3686_v32 = vld [vmem:[%s4384_s0 + $0xe8] sm:$0xff]   ;;  %v3683_v33 = vld [vmem:[%s4384_s0 + $0x80] sm:$0xff]   ;;  %v3685_v36 = vld [vmem:[%s4384_s0 + $0x78] sm:$0xff]  }
   0xe   :  { %v3688_v35 = vld [vmem:[%s4384_s0 + $0xe0] sm:$0xff]   ;;  %v1104_v37 = vld [vmem:[%s4386_s2 + $0x38] sm:$0xff]  ;;  %v3687_v40 = vld [vmem:[%s4384_s0 + $0x70] sm:$0xff]  }
   0xf   :  { %3386 = vmatpush3.bf16.msra.mxu1 %v3661_v7  ;;  %41 = vperm.xlu0 %3655, %v23_v29   ;;  %v1101_v38 = vld [vmem:[%s4386_s2 + $0x20] sm:$0xff]  ;;  %v3690_v39 = vld [vmem:[%s4384_s0 + $0xd8] sm:$0xff]   ;;  %v1102_v41 = vld [vmem:[%s4386_s2 + $0x28] sm:$0xff] }
  0x10   :  { %3387 = vmatprep.subr.bf16.mxu1 %v3663_v10  ;;  %3418 = vmatpush3.bf16.msra.mxu0 %v3666_v9  ;;  %v1675_v42 = vld [vmem:[%s4386_s2 + $0x70] sm:$0xff]  ;;  %v3689_v44 = vld [vmem:[%s4384_s0 + $0x68] sm:$0xff]   ;;  %v1676_v45 = vld [vmem:[%s4386_s2 + $0x78] sm:$0xff] }
  0x11   :  { %3419 = vmatprep.subr.bf16.mxu0 %v3670_v11  ;;  %31 = vperm.xlu1 %3656, %v21_v31   ;;  %v3692_v43 = vld [vmem:[%s4384_s0 + $0xd0] sm:$0xff]   ;;  %v3691_v46 = vld [vmem:[%s4384_s0 + $0x60] sm:$0xff]   ;;  %v3694_v47 = vld [vmem:[%s4384_s0 + $0xc8] sm:$0xff]  }
  0x12   :  { %v1673_v48 = vld [vmem:[%s4386_s2 + $0x60] sm:$0xff]  ;;  %v1674_v49 = vld [vmem:[%s4386_s2 + $0x68] sm:$0xff]  ;;  %v1671_v50 = vld [vmem:[%s4386_s2 + $0x50] sm:$0xff] }
  0x13   :  { %3388 = vmatpush3.bf16.msra.mxu1 %v3663_v10  ;;  %1117 = vperm.xlu0 %3655, %v1103_v34   ;;  %v3696_v51 = vld [vmem:[%s4384_s0 + $0xc0] sm:$0xff]   ;;  %v3693_v52 = vld [vmem:[%s4384_s0 + $0xc8] sm:$0xff]   ;;  %v1672_v53 = vld [vmem:[%s4386_s2 + $0x58] sm:$0xff] }
  0x14   :  { %3389 = vmatprep.subr.bf16.mxu1 %v3665_v12  ;;  %3420 = vmatpush3.bf16.msra.mxu0 %v3670_v11  ;;  %v1669_v54 = vld [vmem:[%s4386_s2 + $0x40] sm:$0xff]  ;;  %v1670_v56 = vld [vmem:[%s4386_s2 + $0x48] sm:$0xff]  ;;  %v2125_v57 = vld [vmem:[%s4386_s2 + $0xb0] sm:$0xff] }
  0x15   :  { %3421 = vmatprep.subr.bf16.mxu0 %v3672_v13  ;;  %1122 = vperm.xlu1 %3656, %v1104_v37   ;;  %v3695_v55 = vld [vmem:[%s4384_s0 + $0xc0] sm:$0xff]   ;;  %v3697_v58 = vld [vmem:[%s4384_s0 + $0xb8] sm:$0xff]  }
  0x16   :  { %v2126_v59 = vld [vmem:[%s4386_s2 + $0xb8] sm:$0xff]  ;;  %v2123_v60 = vld [vmem:[%s4386_s2 + $0xa0] sm:$0xff] }
  0x17   :  { %3390 = vmatpush3.bf16.msra.mxu1 %v3665_v12  ;;  %1107 = vperm.xlu0 %3655, %v1101_v38  }
  0x18   :  { %3395 = vmatprep.subr.bf16.mxu1 %v3669_v14  ;;  %3422 = vmatpush3.bf16.msra.mxu0 %v3672_v13 }
  0x19   :  { %3443 = vmatprep.subr.bf16.mxu0 %v3674_v16  ;;  %1112 = vperm.xlu1 %3656, %v1102_v41  }
  0x1a   :  { %3392 = vmatmul.mubr.msk.bf16.vlgmr.msra.gmra.mxu1 %vm106_vm0, %v3888_v15 }
  0x1b   :  { %3396 = vmatpush3.bf16.msra.mxu1 %v3669_v14  ;;  %3407 = vmatprep.mubr.msk.bf16.mxu1 %vm106_vm0, %v3861_v8 }
  0x1c   :  { %3397 = vmatprep.subr.bf16.mxu1 %v3671_v17  ;;  %3424 = vmatmul.mubr.msk.bf16.vlgmr.msra.gmra.mxu0 %vm106_vm0, %v3888_v15 }
  0x1d   :  { %3444 = vmatpush3.bf16.msra.mxu0 %v3674_v16  ;;  %3455 = vmatprep.mubr.msk.bf16.mxu0 %vm106_vm0, %v3861_v8 }
  0x1e   :  { %3445 = vmatprep.subr.bf16.mxu0 %v3676_v18  ;;  %1709 = vperm.xlu0 %3655, %v1675_v42  }
  0x1f   :  { %3398 = vmatpush3.bf16.msra.mxu1 %v3671_v17  ;;  %1714 = vperm.xlu1 %3656, %v1676_v45  }
  0x20   :  { %3399 = vmatprep.subr.bf16.mxu1 %v3673_v19 }
  0x21   :  { %3446 = vmatpush3.bf16.msra.mxu0 %v3676_v18 }
  0x22   :  { %3447 = vmatprep.subr.bf16.mxu0 %v3678_v20  ;;  %1699 = vperm.xlu0 %3655, %v1673_v48  }
  0x23   :  { %3400 = vmatpush3.bf16.msra.mxu1 %v3673_v19  ;;  %1704 = vperm.xlu1 %3656, %v1674_v49  }
  0x24   :  { %3401 = vmatprep.subr.bf16.mxu1 %v3675_v21 }
  0x25   :  { %3448 = vmatpush3.bf16.msra.mxu0 %v3678_v20 }
  0x26   :  { %3449 = vmatprep.subr.bf16.mxu0 %v3680_v22  ;;  %1689 = vperm.xlu0 %3655, %v1671_v50  }
  0x27   :  { %3402 = vmatpush3.bf16.msra.mxu1 %v3675_v21  ;;  %1694 = vperm.xlu1 %3656, %v1672_v53  }
  0x28   :  { %3403 = vmatprep.subr.bf16.mxu1 %v3677_v23 }
  0x29   :  { %3450 = vmatpush3.bf16.msra.mxu0 %v3680_v22 }
  0x2a   :  { %3451 = vmatprep.subr.bf16.mxu0 %v3682_v24  ;;  %1679 = vperm.xlu0 %3655, %v1669_v54  }
  0x2b   :  { %3404 = vmatpush3.bf16.msra.mxu1 %v3677_v23  ;;  %1684 = vperm.xlu1 %3656, %v1670_v56  }
  0x2c   :  { %3405 = vmatprep.subr.bf16.mxu1 %v3679_v25 }
  0x2d   :  { %3452 = vmatpush3.bf16.msra.mxu0 %v3682_v24 }
  0x2e   :  { %3453 = vmatprep.subr.bf16.mxu0 %v3684_v27  ;;  %2159 = vperm.xlu0 %3655, %v2125_v57  }
  0x2f   :  { %3406 = vmatpush3.bf16.msra.mxu1 %v3679_v25 }
  0x30   :  { %3427 = vmatprep.subr.bf16.mxu1 %v3681_v30 }
  0x31   :  { %3454 = vmatpush3.bf16.msra.mxu0 %v3684_v27 }
  0x32   :  { %3408 = vmatmul.mubr.msk.bf16.vlgmr.msra.gmra.mxu1 %vm106_vm0, %v3888_v15  ;;  %3475 = vmatprep.subr.bf16.mxu0 %v3686_v32 }
  0x33   :  { %3428 = vmatpush3.bf16.msra.mxu1 %v3681_v30  ;;  %3439 = vmatprep.mubr.msk.bf16.mxu1 %vm106_vm0, %v3861_v8 }
  0x34   :  { %3429 = vmatprep.subr.bf16.mxu1 %v3683_v33  ;;  %3456 = vmatmul.mubr.msk.bf16.vlgmr.msra.gmra.mxu0 %vm106_vm0, %v3888_v15 }
  0x35   :  { %3476 = vmatpush3.bf16.msra.mxu0 %v3686_v32  ;;  %3487 = vmatprep.mubr.msk.bf16.mxu0 %vm106_vm0, %v3861_v8 }
  0x36   :  { %3477 = vmatprep.subr.bf16.mxu0 %v3688_v35 }
  0x37   :  { %3430 = vmatpush3.bf16.msra.mxu1 %v3683_v33 }
  0x38   :  { %3431 = vmatprep.subr.bf16.mxu1 %v3685_v36 }
  0x39   :  { %3478 = vmatpush3.bf16.msra.mxu0 %v3688_v35 }
  0x3a   :  { %3479 = vmatprep.subr.bf16.mxu0 %v3690_v39 }
  0x3b   :  { %3432 = vmatpush3.bf16.msra.mxu1 %v3685_v36 }
  0x3c   :  { %3433 = vmatprep.subr.bf16.mxu1 %v3687_v40 }
  0x3d   :  { %3480 = vmatpush3.bf16.msra.mxu0 %v3690_v39 }
  0x3e   :  { %3481 = vmatprep.subr.bf16.mxu0 %v3692_v43 }
  0x3f   :  { %3434 = vmatpush3.bf16.msra.mxu1 %v3687_v40 }
  0x40   :  { %3435 = vmatprep.subr.bf16.mxu1 %v3689_v44 }
  0x41   :  { %3482 = vmatpush3.bf16.msra.mxu0 %v3692_v43 }
  0x42   :  { %3483 = vmatprep.subr.bf16.mxu0 %v3694_v47 }
  0x43   :  { %3436 = vmatpush3.bf16.msra.mxu1 %v3689_v44 }
  0x44   :  { %3437 = vmatprep.subr.bf16.mxu1 %v3691_v46 }
  0x45   :  { %3484 = vmatpush3.bf16.msra.mxu0 %v3694_v47 }
  0x46   :  { %3485 = vmatprep.subr.bf16.mxu0 %v3696_v51 }
  0x47   :  { %3438 = vmatpush3.bf16.msra.mxu1 %v3691_v46 }
  0x48   :  { %3459 = vmatprep.subr.bf16.mxu1 %v3693_v52 }
  0x49   :  { %3486 = vmatpush3.bf16.msra.mxu0 %v3696_v51 }
  0x4a   :  { %3440 = vmatmul.mubr.msk.bf16.vlgmr.msra.gmra.mxu1 %vm106_vm0, %v3888_v15 }
  0x4b   :  { %3460 = vmatpush3.bf16.msra.mxu1 %v3693_v52  ;;  %3471 = vmatprep.mubr.msk.bf16.mxu1 %vm106_vm0, %v3861_v8 }
  0x4c   :  { %3461 = vmatprep.subr.bf16.mxu1 %v3695_v55  ;;  %3488 = vmatmul.mubr.msk.bf16.vlgmr.msra.gmra.mxu0 %vm106_vm0, %v3888_v15 }
  0x4d   :  { %8 = vsyncpa [#allocation5], 0  ;;  %v3698_v61 = vld [vmem:[%s4384_s0 + $0xb0] sm:$0xff]   ;;  %2164 = vperm.xlu1 %3656, %v2126_v59   ;;  %2149 = vperm.xlu0 %3655, %v2123_v60   ;;  %v2124_v62 = vld [vmem:[%s4386_s2 + $0xa8] sm:$0xff] }
  0x4e   :  { %v2121_v63 = vld [vmem:[%s4386_s2 + $0x90] sm:$0xff]  ;;  %v3699_v0 = vld [vmem:[%s4384_s0 + $0xa8] sm:$0xff]   ;;  %v2122_v1 = vld [vmem:[%s4386_s2 + $0x98] sm:$0xff] }
  0x4f   :  { %3462 = vmatpush3.bf16.msra.mxu1 %v3695_v55  ;;  %v2119_v3 = vld [vmem:[%s4386_s2 + $0x80] sm:$0xff]  ;;  %v2120_v5 = vld [vmem:[%s4386_s2 + $0x88] sm:$0xff]  ;;  %v2419_v6 = vld [vmem:[%s4386_s2 + $0xf0] sm:$0xff] }
  0x50   :  { %3463 = vmatprep.subr.bf16.mxu1 %v3697_v58  ;;  %v3700_v4 = vld [vmem:[%s4384_s0 + $0xa0] sm:$0xff]   ;;  %v3701_v7 = vld [vmem:[%s4384_s0 + $0x108] sm:$0xff]   ;;  %v2420_v9 = vld [vmem:[%s4386_s2 + $0xf8] sm:$0xff] }
  0x51   :  { %2154 = vperm.xlu1 %3656, %v2124_v62   ;;  %2139 = vperm.xlu0 %3655, %v2121_v63   ;;  %v2417_v10 = vld [vmem:[%s4386_s2 + $0xe0] sm:$0xff]  ;;  %v2418_v12 = vld [vmem:[%s4386_s2 + $0xe8] sm:$0xff]  ;;  %v2415_v13 = vld [vmem:[%s4386_s2 + $0xd0] sm:$0xff] }
  0x52   :  { %v3702_v11 = vld [vmem:[%s4384_s0 + $0x100] sm:$0xff]   ;;  %v3703_v14 = vld [vmem:[%s4384_s0 + $0xf8] sm:$0xff]   ;;  %v2414_v18 = vld [vmem:[%s4386_s2 + $0xc8] sm:$0xff] }
  0x53   :  { %3464 = vmatpush3.bf16.msra.mxu1 %v3697_v58  ;;  %v2416_v16 = vld [vmem:[%s4386_s2 + $0xd8] sm:$0xff]  ;;  %v2413_v17 = vld [vmem:[%s4386_s2 + $0xc0] sm:$0xff]  ;;  %v3705_v20 = vld [vmem:[%s4384_s0 + $0xe8] sm:$0xff]  }
  0x54   :  { %3465 = vmatprep.subr.bf16.mxu1 %v3698_v61  ;;  %v2594_v19 = vld [vmem:[%s4386_s2 + $0x100] sm:$0xff]  ;;  %v2595_v21 = vld [vmem:[%s4386_s2 + $0x108] sm:$0xff]  ;;  %v2596_v22 = vld [vmem:[%s4386_s2 + $0x110] sm:$0xff] }
  0x55   :  { %2144 = vperm.xlu1 %3656, %v2122_v1   ;;  %2129 = vperm.xlu0 %3655, %v2119_v3   ;;  %v3706_v23 = vld [vmem:[%s4384_s0 + $0xe0] sm:$0xff]   ;;  %v2597_v24 = vld [vmem:[%s4386_s2 + $0x118] sm:$0xff]  ;;  %v2599_v26 = vld [vmem:[%s4386_s2 + $0x128] sm:$0xff] }
  0x56   :  { %v2598_v25 = vld [vmem:[%s4386_s2 + $0x120] sm:$0xff]  ;;  %v2600_v27 = vld [vmem:[%s4386_s2 + $0x130] sm:$0xff]  ;;  %v2601_v28 = vld [vmem:[%s4386_s2 + $0x138] sm:$0xff] }
  0x57   :  { %3466 = vmatpush3.bf16.msra.mxu1 %v3698_v61  ;;  %v4143_v29 = vld [vmem:[#allocation2 + $0x8] sm:$0xff]   ;;  %v4147_v30 = vld [vmem:[#allocation2] sm:$0xff]  }
  0x58   :  { %3467 = vmatprep.subr.bf16.mxu1 %v3699_v0  ;;  %1719 = vst [vmem:[#allocation2 + $0x8] sm:$0xf] %v3803_v2  ;;  %1720 = vst [vmem:[#allocation2 + $0xc] sm:$0xf] %v3803_v2  ;;  %v4154_v31 = vld [vmem:[%s4385_s1 + $0x20] ss:$8 sps:$4 sm:$0xff]  }
  0x59   :  { %2134 = vperm.xlu1 %3656, %v2120_v5   ;;  %2453 = vperm.xlu0 %3655, %v2419_v6   ;;  %1717 = vst [vmem:[#allocation2] sm:$0xf] %v3803_v2  ;;  %1718 = vst [vmem:[#allocation2 + $0x4] sm:$0xf] %v3803_v2 }
  0x5a   :  { %3519 = vmatprep.mubr.msk.bf16.mxu0 %vm106_vm0, %v4154_v31 }
  0x5b   :  { %3468 = vmatpush3.bf16.msra.mxu1 %v3699_v0 }
  0x5c   :  { %3469 = vmatprep.subr.bf16.mxu1 %v3700_v4 }
  0x5d   :  { %2458 = vperm.xlu1 %3656, %v2420_v9   ;;  %2443 = vperm.xlu0 %3655, %v2417_v10  }
  0x5f   :  { %3470 = vmatpush3.bf16.msra.mxu1 %v3700_v4 }
  0x60   :  { %3491 = vmatprep.subr.bf16.mxu1 %v3701_v7 }
  0x61   :  { %2448 = vperm.xlu1 %3656, %v2418_v12   ;;  %2433 = vperm.xlu0 %3655, %v2415_v13  }
  0x62   :  { %3472 = vmatmul.mubr.msk.bf16.vlgmr.msra.gmra.mxu1 %vm106_vm0, %v3888_v15 }
  0x63   :  { %3492 = vmatpush3.bf16.msra.mxu1 %v3701_v7  ;;  %3503 = vmatprep.mubr.msk.bf16.mxu1 %vm106_vm0, %v3861_v8  ;;  %v3704_v8 = vld [vmem:[%s4384_s0 + $0xf0] sm:$0xff]  }
  0x64   :  { %3493 = vmatprep.subr.bf16.mxu1 %v3702_v11 }
  0x65   :  { %2438 = vperm.xlu1 %3656, %v2416_v16   ;;  %2423 = vperm.xlu0 %3655, %v2413_v17  }
  0x67   :  { %3494 = vmatpush3.bf16.msra.mxu1 %v3702_v11 }
  0x68   :  { %3495 = vmatprep.subr.bf16.mxu1 %v3703_v14 }
  0x69   :  { %2428 = vperm.xlu1 %3656, %v2414_v18   ;;  %2604 = vperm.xlu0 %3655, %v2594_v19  }
  0x6b   :  { %3496 = vmatpush3.bf16.msra.mxu1 %v3703_v14 }
  0x6c   :  { %3497 = vmatprep.subr.bf16.mxu1 %v3704_v8 }
  0x6d   :  { %2609 = vperm.xlu1 %3656, %v2595_v21   ;;  %2614 = vperm.xlu0 %3655, %v2596_v22  }
  0x6f   :  { %3498 = vmatpush3.bf16.msra.mxu1 %v3704_v8 }
  0x70   :  { %3499 = vmatprep.subr.bf16.mxu1 %v3705_v20 }
  0x71   :  { %2619 = vperm.xlu1 %3656, %v2597_v24   ;;  %2624 = vperm.xlu0 %3655, %v2598_v25  }
  0x73   :  { %3500 = vmatpush3.bf16.msra.mxu1 %v3705_v20 }
  0x74   :  { %3501 = vmatprep.subr.bf16.mxu1 %v3706_v23 }
  0x75   :  { %2629 = vperm.xlu1 %3656, %v2599_v26   ;;  %2634 = vperm.xlu0 %3655, %v2600_v27  }
  0x77   :  { %3502 = vmatpush3.bf16.msra.mxu1 %v3706_v23 }
  0x79   :  { %2639 = vperm.xlu1 %3656, %v2601_v28  }
  0x7a   :  { %3504 = vmatmul.mubr.msk.bf16.vlgmr.msra.gmra.mxu1 %vm106_vm0, %v3888_v15 }
  0x7b   :  { %3535 = vmatprep.mubr.msk.bf16.mxu1 %vm106_vm0, %v4154_v31 }
  0x86   :  { %v4160_v15 = vpop.permute.xlu0 %36 }
  0x88   :  { %v4162_v32 = vpop.permute.xlu1 %26 }
  0x8a   :  { %v4166_v38 = vpop.permute.xlu0 %41 }
  0x8c   :  { %v4170_v44 = vpop.permute.xlu1 %31 }
  0xda   :  { %v3393_v33 = vpop.f32.mrf.mxu1 }
  0xdb   :  { %v156_v34 = vadd.f32 %v3393_v33, %v4160_v15 }
  0xdc   :  { %v147_v35 = vpop.f32.mrf.mxu1  ;;  %v3425_v37 = vpop.f32.mrf.mxu0 }
  0xdd   :  { %v148_v36 = vadd.f32 %v147_v35, %v4162_v32  ;;  %v168_v39 = vmul.f32 0.02, %v156_v34  ;;  %v414_v41 = vadd.f32 %v3425_v37, %v4160_v15  ;;  %vm164_vm1 = vcmp.gt.f32.partialorder %v156_v34, 0.0 }
  0xde   :  { %v3394_v40 = vpop.f32.mrf.mxu1  ;;  %v405_v43 = vpop.f32.mrf.mxu0 }
  0xdf   :  { %v159_v42 = vadd.f32 %v3394_v40, %v4166_v38  ;;  %vm422_vm2 = vcmp.gt.f32.partialorder %v414_v41, 0.0  ;;  %v426_v46 = vmul.f32 0.02, %v414_v41  ;;  %v406_v47 = vadd.f32 %v405_v43, %v4162_v32 }
  0xe0   :  { %v150_v45 = vpop.f32.mrf.mxu1  ;;  %v166_v48 = vmul.f32 0.02, %v148_v36  ;;  %v3426_v51 = vpop.f32.mrf.mxu0  ;;  %v172_v52 = vsel %vm164_vm1, %v156_v34, %v168_v39  ;;  %vm162_vm4 = vcmp.gt.f32.partialorder %v148_v36, 0.0 }
  0xe1   :  { %vm165_vm3 = vcmp.gt.f32.partialorder %v159_v42, 0.0  ;;  %v169_v49 = vmul.f32 0.02, %v159_v42  ;;  %v151_v50 = vadd.f32 %v150_v45, %v4170_v44  ;;  %v430_v53 = vsel %vm422_vm2, %v414_v41, %v426_v46 }
  0xe2   :  { %v417_v54 = vadd.f32 %v3426_v51, %v4166_v38  ;;  %v424_v57 = vmul.f32 0.02, %v406_v47  ;;  %vm420_vm6 = vcmp.gt.f32.partialorder %v406_v47, 0.0  ;;  %v408_v60 = vpop.f32.mrf.mxu0  ;;  %v170_v61 = vsel %vm162_vm4, %v148_v36, %v166_v48 }
  0xe3   :  { %v173_v55 = vsel %vm165_vm3, %v159_v42, %v169_v49  ;;  %vm163_vm5 = vcmp.gt.f32.partialorder %v151_v50, 0.0  ;;  %v167_v56 = vmul.f32 0.02, %v151_v50  ;;  %v409_v63 = vadd.f32 %v408_v60, %v4170_v44 }
  0xe4   :  { %v3063_v58 = vpack.c.bf16 %v173_v55, %v172_v52  ;;  %vm423_vm7 = vcmp.gt.f32.partialorder %v417_v54, 0.0  ;;  %v427_v59 = vmul.f32 0.02, %v417_v54  ;;  %v428_v3 = vsel %vm420_vm6, %v406_v47, %v424_v57 }
  0xe5   :  { %v171_v62 = vsel %vm163_vm5, %v151_v50, %v167_v56  ;;  %vm421_vm8 = vcmp.gt.f32.partialorder %v409_v63, 0.0  ;;  %v425_v5 = vmul.f32 0.02, %v409_v63 }
  0xe6   :  { %3216 = vst [vmem:[#allocation2 + $0x18] sm:$0xff] %v3063_v58   ;;  %v3058_v0 = vpack.c.bf16 %v171_v62, %v170_v61  ;;  %v431_v1 = vsel %vm423_vm7, %v417_v54, %v427_v59 }
  0xe7   :  { %v3083_v4 = vpack.c.bf16 %v431_v1, %v430_v53  ;;  %v429_v6 = vsel %vm421_vm8, %v409_v63, %v425_v5 }
  0xe8   :  { %3215 = vst [vmem:[#allocation2 + $0x10] sm:$0xff] %v3058_v0   ;;  %v3078_v7 = vpack.c.bf16 %v429_v6, %v428_v3 }
  0xe9   :  { %3220 = vst [vmem:[#allocation2 + $0x38] sm:$0xff] %v3083_v4  }
  0xea   :  { %3219 = vst [vmem:[#allocation2 + $0x30] sm:$0xff] %v3078_v7  }
  0xed   :  { %v4176_v9 = vld [vmem:[#allocation2 + $0x18] sm:$0xff]  }
  0xee   :  { %1723 = vst [vmem:[#allocation2 + $0x18] sm:$0xf] %v3803_v2  ;;  %1724 = vst [vmem:[#allocation2 + $0x1c] sm:$0xf] %v3803_v2 }
  0xef   :  { %v4180_v10 = vld [vmem:[#allocation2 + $0x10] sm:$0xff]  }
  0xf0   :  { %1721 = vst [vmem:[#allocation2 + $0x10] sm:$0xf] %v3803_v2  ;;  %1722 = vst [vmem:[#allocation2 + $0x14] sm:$0xf] %v3803_v2 }
  0xf2   :  { %v3409_v11 = vpop.f32.mrf.mxu1 }
  0xf3   :  { %v285_v12 = vadd.f32 %v3409_v11, %v4160_v15 }
  0xf4   :  { %v276_v13 = vpop.f32.mrf.mxu1  ;;  %v3457_v16 = vpop.f32.mrf.mxu0 }
  0xf5   :  { %v277_v14 = vadd.f32 %v276_v13, %v4162_v32  ;;  %v297_v17 = vmul.f32 0.02, %v285_v12  ;;  %v672_v18 = vadd.f32 %v3457_v16, %v4160_v15  ;;  %vm293_vm9 = vcmp.gt.f32.partialorder %v285_v12, 0.0 }
  0xf6   :  { %v3410_v8 = vpop.f32.mrf.mxu1  ;;  %v663_v20 = vpop.f32.mrf.mxu0 }
  0xf7   :  { %v288_v19 = vadd.f32 %v3410_v8, %v4166_v38  ;;  %vm680_vm10 = vcmp.gt.f32.partialorder %v672_v18, 0.0  ;;  %v684_v22 = vmul.f32 0.02, %v672_v18  ;;  %v664_v23 = vadd.f32 %v663_v20, %v4162_v32 }
  0xf8   :  { %v279_v21 = vpop.f32.mrf.mxu1  ;;  %v295_v24 = vmul.f32 0.02, %v277_v14  ;;  %v3458_v27 = vpop.f32.mrf.mxu0  ;;  %v301_v28 = vsel %vm293_vm9, %v285_v12, %v297_v17  ;;  %vm291_vm12 = vcmp.gt.f32.partialorder %v277_v14, 0.0 }
  0xf9   :  { %vm294_vm11 = vcmp.gt.f32.partialorder %v288_v19, 0.0  ;;  %v298_v25 = vmul.f32 0.02, %v288_v19  ;;  %v280_v26 = vadd.f32 %v279_v21, %v4170_v44  ;;  %v688_v33 = vsel %vm680_vm10, %v672_v18, %v684_v22 }
  0xfa   :  { %v675_v34 = vadd.f32 %v3458_v27, %v4166_v38  ;;  %v682_v37 = vmul.f32 0.02, %v664_v23  ;;  %vm678_vm14 = vcmp.gt.f32.partialorder %v664_v23, 0.0  ;;  %v666_v41 = vpop.f32.mrf.mxu0  ;;  %v299_v42 = vsel %vm291_vm12, %v277_v14, %v295_v24 }
  0xfb   :  { %v302_v35 = vsel %vm294_vm11, %v288_v19, %v298_v25  ;;  %vm292_vm13 = vcmp.gt.f32.partialorder %v280_v26, 0.0  ;;  %v296_v36 = vmul.f32 0.02, %v280_v26  ;;  %v667_v45 = vadd.f32 %v666_v41, %v4170_v44 }
  0xfc   :  { %v3073_v39 = vpack.c.bf16 %v302_v35, %v301_v28  ;;  %vm681_vm15 = vcmp.gt.f32.partialorder %v675_v34, 0.0  ;;  %v685_v40 = vmul.f32 0.02, %v675_v34  ;;  %v686_v48 = vsel %vm678_vm14, %v664_v23, %v682_v37  ;;  %v3717_v37 = vld [vmem:[#allocation2 + $0x38] sm:$0xff]  }
  0xfd   :  { %v300_v43 = vsel %vm292_vm13, %v280_v26, %v296_v36  ;;  %vm679_vm1 = vcmp.gt.f32.partialorder %v667_v45, 0.0  ;;  %v683_v50 = vmul.f32 0.02, %v667_v45 }
  0xfe   :  { %3218 = vst [vmem:[#allocation2 + $0x28] sm:$0xff] %v3073_v39   ;;  %v3068_v46 = vpack.c.bf16 %v300_v43, %v299_v42  ;;  %v689_v47 = vsel %vm681_vm15, %v675_v34, %v685_v40  ;;  %v3718_v43 = vld [vmem:[#allocation2 + $0x30] sm:$0xff]  }
  0xff   :  { %v3103_v49 = vpack.c.bf16 %v689_v47, %v688_v33  ;;  %v687_v51 = vsel %vm679_vm1, %v667_v45, %v683_v50  ;;  %v4210_v33 = vld [vmem:[%s4385_s1 + $0x30] ss:$8 sps:$4 sm:$0xff]  }
 0x100   :  { %3217 = vst [vmem:[#allocation2 + $0x20] sm:$0xff] %v3068_v46   ;;  %v3098_v52 = vpack.c.bf16 %v687_v51, %v686_v48 }
 0x101   :  { %3224 = vst [vmem:[#allocation2 + $0x58] sm:$0xff] %v3103_v49  }
 0x102   :  { %3223 = vst [vmem:[#allocation2 + $0x50] sm:$0xff] %v3098_v52  }
 0x105   :  { %v3707_v53 = vld [vmem:[#allocation2 + $0x28] sm:$0xff]  }
 0x106   :  { %3507 = vmatprep.subr.bf16.mxu0 %v3707_v53  ;;  %v3719_v52 = vld [vmem:[#allocation2 + $0x28] sm:$0xff]  }
 0x107   :  { %v3708_v54 = vld [vmem:[#allocation2 + $0x20] sm:$0xff]   ;;  %3508 = vmatpush3.bf16.msra.mxu0 %v3707_v53 }
 0x108   :  { %3509 = vmatprep.subr.bf16.mxu0 %v3708_v54 }
 0x10a   :  { %v3441_v55 = vpop.f32.mrf.mxu1 }
 0x10b   :  { %v543_v56 = vadd.f32 %v3441_v55, %v4160_v15  ;;  %3510 = vmatpush3.bf16.msra.mxu0 %v3708_v54 }
 0x10c   :  { %v534_v57 = vpop.f32.mrf.mxu1  ;;  %3511 = vmatprep.subr.bf16.mxu0 %v4176_v9  ;;  %v3489_v59 = vpop.f32.mrf.mxu0 }
 0x10d   :  { %v535_v58 = vadd.f32 %v534_v57, %v4162_v32  ;;  %v555_v60 = vmul.f32 0.02, %v543_v56  ;;  %v930_v62 = vadd.f32 %v3489_v59, %v4160_v15  ;;  %vm551_vm2 = vcmp.gt.f32.partialorder %v543_v56, 0.0  ;;  %v3720_v57 = vld [vmem:[#allocation2 + $0x20] sm:$0xff]  }
 0x10e   :  { %v3442_v61 = vpop.f32.mrf.mxu1  ;;  %v921_v0 = vpop.f32.mrf.mxu0 }
 0x10f   :  { %v546_v63 = vadd.f32 %v3442_v61, %v4166_v38  ;;  %3512 = vmatpush3.bf16.msra.mxu0 %v4176_v9  ;;  %vm938_vm3 = vcmp.gt.f32.partialorder %v930_v62, 0.0  ;;  %v942_v3 = vmul.f32 0.02, %v930_v62  ;;  %v922_v4 = vadd.f32 %v921_v0, %v4162_v32 }
 0x110   :  { %v537_v1 = vpop.f32.mrf.mxu1  ;;  %v553_v5 = vmul.f32 0.02, %v535_v58  ;;  %3513 = vmatprep.subr.bf16.mxu0 %v4180_v10  ;;  %v3490_v11 = vpop.f32.mrf.mxu0  ;;  %v559_v12 = vsel %vm551_vm2, %v543_v56, %v555_v60  ;;  %vm549_vm5 = vcmp.gt.f32.partialorder %v535_v58, 0.0 }
 0x111   :  { %vm552_vm4 = vcmp.gt.f32.partialorder %v546_v63, 0.0  ;;  %v556_v6 = vmul.f32 0.02, %v546_v63  ;;  %v538_v7 = vadd.f32 %v537_v1, %v4170_v44  ;;  %v946_v13 = vsel %vm938_vm3, %v930_v62, %v942_v3  ;;  %v3723_v62 = vld [vmem:[#allocation2 + $0x58] sm:$0xff]  }
 0x112   :  { %v933_v14 = vadd.f32 %v3490_v11, %v4166_v38  ;;  %v940_v17 = vmul.f32 0.02, %v922_v4  ;;  %v924_v8 = vpop.f32.mrf.mxu0  ;;  %vm936_vm7 = vcmp.gt.f32.partialorder %v922_v4, 0.0  ;;  %v557_v20 = vsel %vm549_vm5, %v535_v58, %v553_v5  ;;  %v3724_v5 = vld [vmem:[#allocation2 + $0x50] sm:$0xff]  }
 0x113   :  { %v560_v16 = vsel %vm552_vm4, %v546_v63, %v556_v6  ;;  %vm550_vm6 = vcmp.gt.f32.partialorder %v538_v7, 0.0  ;;  %v554_v9 = vmul.f32 0.02, %v538_v7  ;;  %3514 = vmatpush3.bf16.msra.mxu0 %v4180_v10  ;;  %v925_v22 = vadd.f32 %v924_v8, %v4170_v44 }
 0x114   :  { %v3093_v18 = vpack.c.bf16 %v560_v16, %v559_v12  ;;  %vm939_vm8 = vcmp.gt.f32.partialorder %v933_v14, 0.0  ;;  %v943_v19 = vmul.f32 0.02, %v933_v14  ;;  %3515 = vmatprep.subr.bf16.mxu0 %v4143_v29  ;;  %v944_v25 = vsel %vm936_vm7, %v922_v4, %v940_v17 }
 0x115   :  { %v558_v21 = vsel %vm550_vm6, %v538_v7, %v554_v9  ;;  %vm937_vm9 = vcmp.gt.f32.partialorder %v925_v22, 0.0  ;;  %v941_v27 = vmul.f32 0.02, %v925_v22 }
 0x116   :  { %3222 = vst [vmem:[#allocation2 + $0x48] sm:$0xff] %v3093_v18   ;;  %v3088_v23 = vpack.c.bf16 %v558_v21, %v557_v20  ;;  %v947_v24 = vsel %vm939_vm8, %v933_v14, %v943_v19 }
 0x117   :  { %v3123_v26 = vpack.c.bf16 %v947_v24, %v946_v13  ;;  %3516 = vmatpush3.bf16.msra.mxu0 %v4143_v29  ;;  %v945_v10 = vsel %vm937_vm9, %v925_v22, %v941_v27  ;;  %v3739_v22 = vld [vmem:[%s4385_s1 + $0x40] ss:$8 sps:$4 sm:$0xff]   ;;  %v4240_v24 = vpop.permute.xlu1 %1122 }
 0x118   :  { %3221 = vst [vmem:[#allocation2 + $0x40] sm:$0xff] %v3088_v23   ;;  %3517 = vmatprep.subr.bf16.mxu0 %v4147_v30  ;;  %v3118_v28 = vpack.c.bf16 %v945_v10, %v944_v25  ;;  %v4238_v23 = vpop.permute.xlu0 %1117 }
 0x119   :  { %3228 = vst [vmem:[#allocation2 + $0x78] sm:$0xff] %v3123_v26  }
 0x11a   :  { %3227 = vst [vmem:[#allocation2 + $0x70] sm:$0xff] %v3118_v28  }
 0x11b   :  { %3518 = vmatpush3.bf16.msra.mxu0 %v4147_v30 }
 0x11c   :  { %v4243_v27 = vpop.permute.xlu0 %1107 }
 0x11d   :  { %v3715_v34 = vld [vmem:[#allocation2 + $0x48] sm:$0xff]  }
 0x11e   :  { %3520 = vmatmul.mubr.msk.bf16.vlgmr.msra.gmra.mxu0 %vm106_vm0, %v4210_v33  ;;  %3523 = vmatprep.subr.bf16.mxu1 %v3715_v34  ;;  %v3725_v13 = vld [vmem:[#allocation2 + $0x48] sm:$0xff]  }
 0x11f   :  { %v3716_v35 = vld [vmem:[#allocation2 + $0x40] sm:$0xff]   ;;  %3524 = vmatpush3.bf16.msra.mxu1 %v3715_v34  ;;  %3551 = vmatprep.mubr.msk.bf16.mxu0 %vm106_vm0, %v4154_v31 }
 0x120   :  { %3525 = vmatprep.subr.bf16.mxu1 %v3716_v35  ;;  %v3726_v17 = vld [vmem:[#allocation2 + $0x40] sm:$0xff]   ;;  %v3729_v18 = vld [vmem:[#allocation2 + $0x78] sm:$0xff]  }
 0x121   :  { %v3730_v19 = vld [vmem:[#allocation2 + $0x70] sm:$0xff]  }
 0x122   :  { %v3473_v29 = vpop.f32.mrf.mxu1 }
 0x123   :  { %v801_v36 = vadd.f32 %v3473_v29, %v4160_v15  ;;  %3526 = vmatpush3.bf16.msra.mxu1 %v3716_v35  ;;  %v4247_v29 = vpop.permute.xlu1 %1112 }
 0x124   :  { %v792_v39 = vpop.f32.mrf.mxu1  ;;  %3527 = vmatprep.subr.bf16.mxu1 %v3717_v37 }
 0x125   :  { %v793_v40 = vadd.f32 %v792_v39, %v4162_v32  ;;  %v813_v41 = vmul.f32 0.02, %v801_v36  ;;  %vm809_vm10 = vcmp.gt.f32.partialorder %v801_v36, 0.0 }
 0x126   :  { %v3474_v30 = vpop.f32.mrf.mxu1 }
 0x127   :  { %v804_v42 = vadd.f32 %v3474_v30, %v4166_v38  ;;  %3528 = vmatpush3.bf16.msra.mxu1 %v3717_v37  ;;  %v811_v46 = vmul.f32 0.02, %v793_v40  ;;  %vm807_vm12 = vcmp.gt.f32.partialorder %v793_v40, 0.0  ;;  %v817_v49 = vsel %vm809_vm10, %v801_v36, %v813_v41 }
 0x128   :  { %v795_v45 = vpop.f32.mrf.mxu1  ;;  %3529 = vmatprep.subr.bf16.mxu1 %v3718_v43 }
 0x129   :  { %vm810_vm11 = vcmp.gt.f32.partialorder %v804_v42, 0.0  ;;  %v814_v47 = vmul.f32 0.02, %v804_v42  ;;  %v796_v48 = vadd.f32 %v795_v45, %v4170_v44  ;;  %v815_v54 = vsel %vm807_vm12, %v793_v40, %v811_v46 }
 0x12b   :  { %v818_v50 = vsel %vm810_vm11, %v804_v42, %v814_v47  ;;  %vm808_vm13 = vcmp.gt.f32.partialorder %v796_v48, 0.0  ;;  %v812_v51 = vmul.f32 0.02, %v796_v48  ;;  %3530 = vmatpush3.bf16.msra.mxu1 %v3718_v43 }
 0x12c   :  { %v3113_v53 = vpack.c.bf16 %v818_v50, %v817_v49  ;;  %3531 = vmatprep.subr.bf16.mxu1 %v3719_v52 }
 0x12d   :  { %v816_v55 = vsel %vm808_vm13, %v796_v48, %v812_v51 }
 0x12e   :  { %3226 = vst [vmem:[#allocation2 + $0x68] sm:$0xff] %v3113_v53   ;;  %v3108_v56 = vpack.c.bf16 %v816_v55, %v815_v54 }
 0x12f   :  { %3532 = vmatpush3.bf16.msra.mxu1 %v3719_v52 }
 0x130   :  { %3225 = vst [vmem:[#allocation2 + $0x60] sm:$0xff] %v3108_v56   ;;  %3533 = vmatprep.subr.bf16.mxu1 %v3720_v57 }
 0x133   :  { %3534 = vmatpush3.bf16.msra.mxu1 %v3720_v57 }
 0x135   :  { %v3721_v58 = vld [vmem:[#allocation2 + $0x68] sm:$0xff]  }
 0x136   :  { %3536 = vmatmul.mubr.msk.bf16.vlgmr.msra.gmra.mxu1 %vm106_vm0, %v4210_v33  ;;  %3539 = vmatprep.subr.bf16.mxu0 %v3721_v58  ;;  %v3731_v20 = vld [vmem:[#allocation2 + $0x68] sm:$0xff]  }
 0x137   :  { %v3722_v59 = vld [vmem:[#allocation2 + $0x60] sm:$0xff]   ;;  %3540 = vmatpush3.bf16.msra.mxu0 %v3721_v58  ;;  %3567 = vmatprep.mubr.msk.bf16.mxu1 %vm106_vm0, %v4154_v31 }
 0x138   :  { %3541 = vmatprep.subr.bf16.mxu0 %v3722_v59  ;;  %v3732_v21 = vld [vmem:[#allocation2 + $0x60] sm:$0xff]  }
 0x13a   :  { %v3505_v60 = vpop.f32.mrf.mxu1 }
 0x13b   :  { %v1059_v61 = vadd.f32 %v3505_v60, %v4160_v15  ;;  %3542 = vmatpush3.bf16.msra.mxu0 %v3722_v59 }
 0x13c   :  { %v1050_v63 = vpop.f32.mrf.mxu1  ;;  %3543 = vmatprep.subr.bf16.mxu0 %v3723_v62 }
 0x13d   :  { %v1051_v0 = vadd.f32 %v1050_v63, %v4162_v32  ;;  %v1071_v3 = vmul.f32 0.02, %v1059_v61  ;;  %vm1067_vm14 = vcmp.gt.f32.partialorder %v1059_v61, 0.0 }
 0x13e   :  { %v3506_v1 = vpop.f32.mrf.mxu1 }
 0x13f   :  { %v1062_v4 = vadd.f32 %v3506_v1, %v4166_v38  ;;  %3544 = vmatpush3.bf16.msra.mxu0 %v3723_v62  ;;  %v1069_v7 = vmul.f32 0.02, %v1051_v0  ;;  %vm1065_vm1 = vcmp.gt.f32.partialorder %v1051_v0, 0.0  ;;  %v1075_v15 = vsel %vm1067_vm14, %v1059_v61, %v1071_v3 }
 0x140   :  { %v1053_v6 = vpop.f32.mrf.mxu1  ;;  %3545 = vmatprep.subr.bf16.mxu0 %v3724_v5 }
 0x141   :  { %vm1068_vm15 = vcmp.gt.f32.partialorder %v1062_v4, 0.0  ;;  %v1072_v31 = vmul.f32 0.02, %v1062_v4  ;;  %v1054_v11 = vadd.f32 %v1053_v6, %v4170_v44  ;;  %v1073_v16 = vsel %vm1065_vm1, %v1051_v0, %v1069_v7 }
 0x143   :  { %v1076_v12 = vsel %vm1068_vm15, %v1062_v4, %v1072_v31  ;;  %vm1066_vm2 = vcmp.gt.f32.partialorder %v1054_v11, 0.0  ;;  %v1070_v32 = vmul.f32 0.02, %v1054_v11  ;;  %3546 = vmatpush3.bf16.msra.mxu0 %v3724_v5 }
 0x144   :  { %v3133_v14 = vpack.c.bf16 %v1076_v12, %v1075_v15  ;;  %3547 = vmatprep.subr.bf16.mxu0 %v3725_v13 }
 0x145   :  { %v1074_v38 = vsel %vm1066_vm2, %v1054_v11, %v1070_v32 }
 0x146   :  { %3230 = vst [vmem:[#allocation2 + $0x88] sm:$0xff] %v3133_v14   ;;  %v3128_v9 = vpack.c.bf16 %v1074_v38, %v1073_v16 }
 0x147   :  { %3548 = vmatpush3.bf16.msra.mxu0 %v3725_v13 }
 0x148   :  { %3229 = vst [vmem:[#allocation2 + $0x80] sm:$0xff] %v3128_v9   ;;  %3549 = vmatprep.subr.bf16.mxu0 %v3726_v17 }
 0x14b   :  { %3550 = vmatpush3.bf16.msra.mxu0 %v3726_v17  ;;  %v3737_v17 = vld [vmem:[#allocation3 + $0x8] sm:$0xff]  }
 0x14d   :  { %v3727_v44 = vld [vmem:[#allocation2 + $0x88] sm:$0xff]  }
 0x14e   :  { %3552 = vmatmul.mubr.msk.bf16.vlgmr.msra.gmra.mxu0 %vm106_vm0, %v4210_v33  ;;  %3555 = vmatprep.subr.bf16.mxu1 %v3727_v44 }
 0x14f   :  { %v3728_v8 = vld [vmem:[#allocation2 + $0x80] sm:$0xff]   ;;  %3556 = vmatpush3.bf16.msra.mxu1 %v3727_v44  ;;  %3583 = vmatprep.mubr.msk.bf16.mxu0 %vm106_vm0, %v3739_v22 }
 0x150   :  { %3557 = vmatprep.subr.bf16.mxu1 %v3728_v8 }
 0x153   :  { %3558 = vmatpush3.bf16.msra.mxu1 %v3728_v8 }
 0x154   :  { %3559 = vmatprep.subr.bf16.mxu1 %v3729_v18 }
 0x157   :  { %3560 = vmatpush3.bf16.msra.mxu1 %v3729_v18 }
 0x158   :  { %3561 = vmatprep.subr.bf16.mxu1 %v3730_v19 }
 0x15b   :  { %3562 = vmatpush3.bf16.msra.mxu1 %v3730_v19 }
 0x15c   :  { %3563 = vmatprep.subr.bf16.mxu1 %v3731_v20 }
 0x15f   :  { %3564 = vmatpush3.bf16.msra.mxu1 %v3731_v20 }
 0x160   :  { %3565 = vmatprep.subr.bf16.mxu1 %v3732_v21 }
 0x163   :  { %3566 = vmatpush3.bf16.msra.mxu1 %v3732_v21 }
 0x166   :  { %3568 = vmatmul.mubr.msk.bf16.vlgmr.msra.gmra.mxu1 %vm106_vm0, %v4210_v33 }
 0x167   :  { %3603 = vmatprep.mubr.msk.bf16.mxu1 %vm106_vm0, %v3739_v22  ;;  %v3738_v22 = vld [vmem:[#allocation3] sm:$0xff]  }
 0x1de   :  { %v3521_v25 = vpop.f32.mrf.mxu0 }
 0x1df   :  { %v1236_v26 = vadd.f32 %v3521_v25, %v4238_v23 }
 0x1e0   :  { %v1227_v10 = vpop.f32.mrf.mxu0 }
 0x1e1   :  { %v1228_v28 = vadd.f32 %v1227_v10, %v4243_v27  ;;  %v1248_v34 = vmul.f32 0.02, %v1236_v26  ;;  %vm1244_vm3 = vcmp.gt.f32.partialorder %v1236_v26, 0.0  ;;  %v3741_v10 = vld [vmem:[%s4385_s1 + $0x60] ss:$8 sps:$4 sm:$0xff]  }
 0x1e2   :  { %v3522_v33 = vpop.f32.mrf.mxu0 }
 0x1e3   :  { %v1239_v35 = vadd.f32 %v3522_v33, %v4240_v24  ;;  %v1246_v37 = vmul.f32 0.02, %v1228_v28  ;;  %vm1242_vm5 = vcmp.gt.f32.partialorder %v1228_v28, 0.0  ;;  %v1252_v30 = vsel %vm1244_vm3, %v1236_v26, %v1248_v34  ;;  %v3740_v26 = vld [vmem:[%s4385_s1 + $0x50] ss:$8 sps:$4 sm:$0xff]  }
 0x1e4   :  { %v1230_v36 = vpop.f32.mrf.mxu0  ;;  %v3742_v34 = vld [vmem:[%s4385_s1 + $0x70] ss:$8 sps:$4 sm:$0xff]  }
 0x1e5   :  { %vm1245_vm4 = vcmp.gt.f32.partialorder %v1239_v35, 0.0  ;;  %v1249_v39 = vmul.f32 0.02, %v1239_v35  ;;  %v1231_v40 = vadd.f32 %v1230_v36, %v4247_v29  ;;  %v1250_v45 = vsel %vm1242_vm5, %v1228_v28, %v1246_v37 }
 0x1e7   :  { %v1253_v41 = vsel %vm1245_vm4, %v1239_v35, %v1249_v39  ;;  %vm1243_vm6 = vcmp.gt.f32.partialorder %v1231_v40, 0.0  ;;  %v1247_v42 = vmul.f32 0.02, %v1231_v40  ;;  %vm2299_vm4 = vcmask 523264  }
 0x1e8   :  { %v3143_v43 = vpack.c.bf16 %v1253_v41, %v1252_v30 }
 0x1e9   :  { %v1251_v46 = vsel %vm1243_vm6, %v1231_v40, %v1247_v42 }
 0x1ea   :  { %3232 = vst [vmem:[#allocation3 + $0x18] sm:$0xff] %v3143_v43   ;;  %v3138_v47 = vpack.c.bf16 %v1251_v46, %v1250_v45 }
 0x1ec   :  { %3231 = vst [vmem:[#allocation3 + $0x10] sm:$0xff] %v3138_v47  }
 0x1f1   :  { %v3735_v7 = vld [vmem:[#allocation3 + $0x18] sm:$0xff]  }
 0x1f3   :  { %v3736_v13 = vld [vmem:[#allocation3 + $0x10] sm:$0xff]  }
 0x1f6   :  { %v3537_v48 = vpop.f32.mrf.mxu1 }
 0x1f7   :  { %v1365_v49 = vadd.f32 %v3537_v48, %v4238_v23 }
 0x1f8   :  { %v1356_v50 = vpop.f32.mrf.mxu1 }
 0x1f9   :  { %v1357_v51 = vadd.f32 %v1356_v50, %v4243_v27  ;;  %v1377_v53 = vmul.f32 0.02, %v1365_v49  ;;  %vm1373_vm7 = vcmp.gt.f32.partialorder %v1365_v49, 0.0 }
 0x1fa   :  { %v3538_v52 = vpop.f32.mrf.mxu1 }
 0x1fb   :  { %v1368_v54 = vadd.f32 %v3538_v52, %v4240_v24  ;;  %v1375_v56 = vmul.f32 0.02, %v1357_v51  ;;  %vm1371_vm9 = vcmp.gt.f32.partialorder %v1357_v51, 0.0  ;;  %v1381_v59 = vsel %vm1373_vm7, %v1365_v49, %v1377_v53 }
 0x1fc   :  { %v1359_v55 = vpop.f32.mrf.mxu1 }
 0x1fd   :  { %vm1374_vm8 = vcmp.gt.f32.partialorder %v1368_v54, 0.0  ;;  %v1378_v57 = vmul.f32 0.02, %v1368_v54  ;;  %v1360_v58 = vadd.f32 %v1359_v55, %v4247_v29  ;;  %v1379_v63 = vsel %vm1371_vm9, %v1357_v51, %v1375_v56  ;;  %v4282_v55 = vpop.permute.xlu0 %1709  ;;  %v4284_v56 = vpop.permute.xlu1 %1714 }
 0x1ff   :  { %v1382_v60 = vsel %vm1374_vm8, %v1368_v54, %v1378_v57  ;;  %vm1372_vm10 = vcmp.gt.f32.partialorder %v1360_v58, 0.0  ;;  %v1376_v61 = vmul.f32 0.02, %v1360_v58  ;;  %v3763_v54 = vld [vmem:[%s4385_s1 + $0x84] ss:$8 sps:$4 sm:$0xff]  }
 0x200   :  { %v3153_v62 = vpack.c.bf16 %v1382_v60, %v1381_v59 }
 0x201   :  { %v1380_v0 = vsel %vm1372_vm10, %v1360_v58, %v1376_v61  ;;  %v4286_v57 = vpop.permute.xlu0 %1699  ;;  %v4288_v58 = vpop.permute.xlu1 %1704 }
 0x202   :  { %3234 = vst [vmem:[#allocation3 + $0x28] sm:$0xff] %v3153_v62   ;;  %v3148_v1 = vpack.c.bf16 %v1380_v0, %v1379_v63 }
 0x204   :  { %3233 = vst [vmem:[#allocation3 + $0x20] sm:$0xff] %v3148_v1  }
 0x205   :  { %v4290_v59 = vpop.permute.xlu0 %1689  ;;  %v4292_v60 = vpop.permute.xlu1 %1694 }
 0x209   :  { %v3733_v3 = vld [vmem:[#allocation3 + $0x28] sm:$0xff]   ;;  %v4295_v63 = vpop.permute.xlu0 %1679 }
 0x20a   :  { %3571 = vmatprep.subr.bf16.mxu0 %v3733_v3  ;;  %v3747_v52 = vld [vmem:[#allocation3 + $0x28] sm:$0xff]  }
 0x20b   :  { %v3734_v4 = vld [vmem:[#allocation3 + $0x20] sm:$0xff]   ;;  %3572 = vmatpush3.bf16.msra.mxu0 %v3733_v3 }
 0x20c   :  { %3573 = vmatprep.subr.bf16.mxu0 %v3734_v4  ;;  %v3748_v53 = vld [vmem:[#allocation3 + $0x20] sm:$0xff]  }
 0x20e   :  { %v3553_v5 = vpop.f32.mrf.mxu0 }
 0x20f   :  { %v1494_v6 = vadd.f32 %v3553_v5, %v4238_v23  ;;  %3574 = vmatpush3.bf16.msra.mxu0 %v3734_v4 }
 0x210   :  { %v1485_v31 = vpop.f32.mrf.mxu0  ;;  %3575 = vmatprep.subr.bf16.mxu0 %v3735_v7 }
 0x211   :  { %v1486_v11 = vadd.f32 %v1485_v31, %v4243_v27  ;;  %v1506_v12 = vmul.f32 0.02, %v1494_v6  ;;  %vm1502_vm11 = vcmp.gt.f32.partialorder %v1494_v6, 0.0 }
 0x212   :  { %v3554_v15 = vpop.f32.mrf.mxu0 }
 0x213   :  { %v1497_v32 = vadd.f32 %v3554_v15, %v4240_v24  ;;  %3576 = vmatpush3.bf16.msra.mxu0 %v3735_v7  ;;  %v1504_v16 = vmul.f32 0.02, %v1486_v11  ;;  %vm1500_vm13 = vcmp.gt.f32.partialorder %v1486_v11, 0.0  ;;  %v1510_v44 = vsel %vm1502_vm11, %v1494_v6, %v1506_v12  ;;  %v4299_v6 = vpop.permute.xlu1 %1684 }
 0x214   :  { %v1488_v14 = vpop.f32.mrf.mxu0  ;;  %3577 = vmatprep.subr.bf16.mxu0 %v3736_v13 }
 0x215   :  { %vm1503_vm12 = vcmp.gt.f32.partialorder %v1497_v32, 0.0  ;;  %v1507_v38 = vmul.f32 0.02, %v1497_v32  ;;  %v1489_v9 = vadd.f32 %v1488_v14, %v4247_v29  ;;  %v1508_v20 = vsel %vm1500_vm13, %v1486_v11, %v1504_v16 }
 0x217   :  { %v1511_v8 = vsel %vm1503_vm12, %v1497_v32, %v1507_v38  ;;  %vm1501_vm14 = vcmp.gt.f32.partialorder %v1489_v9, 0.0  ;;  %v1505_v18 = vmul.f32 0.02, %v1489_v9  ;;  %3578 = vmatpush3.bf16.msra.mxu0 %v3736_v13 }
 0x218   :  { %v3163_v19 = vpack.c.bf16 %v1511_v8, %v1510_v44  ;;  %3579 = vmatprep.subr.bf16.mxu0 %v3737_v17 }
 0x219   :  { %v1509_v21 = vsel %vm1501_vm14, %v1489_v9, %v1505_v18 }
 0x21a   :  { %3236 = vst [vmem:[#allocation3 + $0x38] sm:$0xff] %v3163_v19   ;;  %v3158_v25 = vpack.c.bf16 %v1509_v21, %v1508_v20 }
 0x21b   :  { %3580 = vmatpush3.bf16.msra.mxu0 %v3737_v17 }
 0x21c   :  { %3235 = vst [vmem:[#allocation3 + $0x30] sm:$0xff] %v3158_v25   ;;  %3581 = vmatprep.subr.bf16.mxu0 %v3738_v22 }
 0x21f   :  { %3582 = vmatpush3.bf16.msra.mxu0 %v3738_v22 }
 0x220   :  { %2312 = vmatprep.subr.bf16.mxu0 %v3803_v2 }
 0x221   :  { %v3745_v51 = vld [vmem:[#allocation3 + $0x38] sm:$0xff]  }
 0x222   :  { %3584 = vmatmul.mubr.msk.bf16.vlgmr.msra.gmra.mxu0 %vm106_vm0, %v3740_v26 }
 0x223   :  { %3587 = vmatprep.mubr.msk.bf16.mxu0 %vm106_vm0, %v3741_v10 }
 0x226   :  { %v3569_v28 = vpop.f32.mrf.mxu1 }
 0x227   :  { %v1623_v33 = vadd.f32 %v3569_v28, %v4238_v23 }
 0x228   :  { %v1614_v35 = vpop.f32.mrf.mxu1 }
 0x229   :  { %v1615_v36 = vadd.f32 %v1614_v35, %v4243_v27  ;;  %v1635_v39 = vmul.f32 0.02, %v1623_v33  ;;  %vm1631_vm15 = vcmp.gt.f32.partialorder %v1623_v33, 0.0 }
 0x22a   :  { %v3570_v37 = vpop.f32.mrf.mxu1  ;;  %3588 = vmatmul.mubr.msk.bf16.gmra.mxu0 %vm106_vm0, %v3742_v34 }
 0x22b   :  { %v1626_v40 = vadd.f32 %v3570_v37, %v4240_v24  ;;  %v1633_v41 = vmul.f32 0.02, %v1615_v36  ;;  %vm1629_vm2 = vcmp.gt.f32.partialorder %v1615_v36, 0.0  ;;  %v1639_v43 = vsel %vm1631_vm15, %v1623_v33, %v1635_v39  ;;  %2971 = vmatprep.mubr.msk.bf16.mxu0 %vm2299_vm4, %v3763_v54 }
 0x22c   :  { %v1617_v30 = vpop.f32.mrf.mxu1 }
 0x22d   :  { %vm1632_vm1 = vcmp.gt.f32.partialorder %v1626_v40, 0.0  ;;  %v1636_v42 = vmul.f32 0.02, %v1626_v40  ;;  %v1618_v23 = vadd.f32 %v1617_v30, %v4247_v29  ;;  %v1637_v27 = vsel %vm1629_vm2, %v1615_v36, %v1633_v41  ;;  %v3746_v29 = vld [vmem:[#allocation3 + $0x30] sm:$0xff]  }
 0x22f   :  { %v1640_v45 = vsel %vm1632_vm1, %v1626_v40, %v1636_v42  ;;  %vm1630_vm3 = vcmp.gt.f32.partialorder %v1618_v23, 0.0  ;;  %v1634_v46 = vmul.f32 0.02, %v1618_v23 }
 0x230   :  { %v3173_v47 = vpack.c.bf16 %v1640_v45, %v1639_v43  ;;  %v3754_v43 = vld [vmem:[#allocation2 + $0x10] sm:$0xff]  }
 0x231   :  { %v1638_v48 = vsel %vm1630_vm3, %v1618_v23, %v1634_v46  ;;  %v3753_v23 = vld [vmem:[#allocation2 + $0x18] sm:$0xff]  }
 0x232   :  { %3238 = vst [vmem:[#allocation3 + $0x48] sm:$0xff] %v3173_v47   ;;  %v3168_v49 = vpack.c.bf16 %v1638_v48, %v1637_v27  ;;  %v3755_v47 = vld [vmem:[#allocation2 + $0x8] sm:$0xff]  }
 0x234   :  { %3237 = vst [vmem:[#allocation3 + $0x40] sm:$0xff] %v3168_v49  }
 0x239   :  { %v3743_v24 = vld [vmem:[#allocation3 + $0x48] sm:$0xff]  }
 0x23a   :  { %3591 = vmatprep.subr.bf16.mxu1 %v3743_v24 }
 0x23b   :  { %v3744_v50 = vld [vmem:[#allocation3 + $0x40] sm:$0xff]   ;;  %3592 = vmatpush3.bf16.msra.mxu1 %v3743_v24 }
 0x23c   :  { %3593 = vmatprep.subr.bf16.mxu1 %v3744_v50 }
 0x23f   :  { %3594 = vmatpush3.bf16.msra.mxu1 %v3744_v50 }
 0x240   :  { %3595 = vmatprep.subr.bf16.mxu1 %v3745_v51 }
 0x243   :  { %3596 = vmatpush3.bf16.msra.mxu1 %v3745_v51  ;;  %v3756_v51 = vld [vmem:[#allocation2] sm:$0xff]  }
 0x244   :  { %3597 = vmatprep.subr.bf16.mxu1 %v3746_v29 }
 0x247   :  { %3598 = vmatpush3.bf16.msra.mxu1 %v3746_v29 }
 0x248   :  { %3599 = vmatprep.subr.bf16.mxu1 %v3747_v52 }
 0x24b   :  { %3600 = vmatpush3.bf16.msra.mxu1 %v3747_v52 }
 0x24c   :  { %3601 = vmatprep.subr.bf16.mxu1 %v3748_v53 }
 0x24f   :  { %3602 = vmatpush3.bf16.msra.mxu1 %v3748_v53 }
 0x252   :  { %3604 = vmatmul.mubr.msk.bf16.vlgmr.msra.gmra.mxu1 %vm106_vm0, %v3740_v26 }
 0x253   :  { %3607 = vmatprep.mubr.msk.bf16.mxu1 %vm106_vm0, %v3741_v10 }
 0x25a   :  { %3608 = vmatmul.mubr.msk.bf16.gmra.mxu1 %vm106_vm0, %v3742_v34 }
 0x2e2   :  { %v3585_v61 = vpop.f32.mrf.mxu0 }
 0x2e3   :  { %v1848_v62 = vadd.f32 %v3585_v61, %v4290_v59 }
 0x2e4   :  { %v1839_v0 = vpop.f32.mrf.mxu0 }
 0x2e5   :  { %v1840_v1 = vadd.f32 %v1839_v0, %v4295_v63  ;;  %v1880_v3 = vmul.f32 0.02, %v1848_v62  ;;  %vm1872_vm0 = vcmp.gt.f32.partialorder %v1848_v62, 0.0 }
 0x2e6   :  { %v3586_v4 = vpop.f32.mrf.mxu0 }
 0x2e7   :  { %v1851_v5 = vadd.f32 %v3586_v4, %v4292_v60  ;;  %v1878_v31 = vmul.f32 0.02, %v1840_v1  ;;  %v1888_v12 = vsel %vm1872_vm0, %v1848_v62, %v1880_v3  ;;  %vm1870_vm6 = vcmp.gt.f32.partialorder %v1840_v1, 0.0 }
 0x2e8   :  { %v1842_v7 = vpop.f32.mrf.mxu0 }
 0x2e9   :  { %vm1873_vm5 = vcmp.gt.f32.partialorder %v1851_v5, 0.0  ;;  %v1881_v11 = vmul.f32 0.02, %v1851_v5  ;;  %v1843_v15 = vadd.f32 %v1842_v7, %v4299_v6  ;;  %v1886_v17 = vsel %vm1870_vm6, %v1840_v1, %v1878_v31 }
 0x2ea   :  { %v3589_v32 = vpop.f32.mrf.mxu0 }
 0x2eb   :  { %v1889_v13 = vsel %vm1873_vm5, %v1851_v5, %v1881_v11  ;;  %vm1871_vm7 = vcmp.gt.f32.partialorder %v1843_v15, 0.0  ;;  %v1879_v14 = vmul.f32 0.02, %v1843_v15  ;;  %v1864_v16 = vadd.f32 %v3589_v32, %v4282_v55 }
 0x2ec   :  { %v3183_v38 = vpack.c.bf16 %v1889_v13, %v1888_v12  ;;  %v1855_v9 = vpop.f32.mrf.mxu0 }
 0x2ed   :  { %v1887_v44 = vsel %vm1871_vm7, %v1843_v15, %v1879_v14  ;;  %v1856_v8 = vadd.f32 %v1855_v9, %v4286_v57  ;;  %v1884_v20 = vmul.f32 0.02, %v1864_v16  ;;  %vm1876_vm8 = vcmp.gt.f32.partialorder %v1864_v16, 0.0 }
 0x2ee   :  { %3240 = vst [vmem:[#allocation2 + $0x28] sm:$0xff] %v3183_v38   ;;  %v3178_v18 = vpack.c.bf16 %v1887_v44, %v1886_v17  ;;  %v3590_v19 = vpop.f32.mrf.mxu0 }
 0x2ef   :  { %v1867_v21 = vadd.f32 %v3590_v19, %v4284_v56  ;;  %v1882_v25 = vmul.f32 0.02, %v1856_v8  ;;  %vm1874_vm10 = vcmp.gt.f32.partialorder %v1856_v8, 0.0  ;;  %v1892_v28 = vsel %vm1876_vm8, %v1864_v16, %v1884_v20  ;;  %v3764_v19 = vld [vmem:[%s4385_s1 + $0x94] ss:$8 sps:$4 sm:$0xff]  }
 0x2f0   :  { %3239 = vst [vmem:[#allocation2 + $0x20] sm:$0xff] %v3178_v18   ;;  %v1858_v22 = vpop.f32.mrf.mxu0  ;;  %v3761_v18 = vld [vmem:[%s4385_s1 + $0x80] ss:$8 sps:$4 sm:$0xff]   ;;  %v3766_v20 = vld [vmem:[%s4385_s1 + $0x90] ss:$8 sps:$4 sm:$0xff]  }
 0x2f1   :  { %vm1877_vm9 = vcmp.gt.f32.partialorder %v1867_v21, 0.0  ;;  %v1885_v26 = vmul.f32 0.02, %v1867_v21  ;;  %v1859_v10 = vadd.f32 %v1858_v22, %v4288_v58  ;;  %v1890_v36 = vsel %vm1874_vm10, %v1856_v8, %v1882_v25  ;;  %v3770_v22 = vld [vmem:[%s4385_s1 + $0xb4] ss:$8 sps:$4 sm:$0xff]  }
 0x2f2   :  { %v3772_v25 = vld [vmem:[%s4385_s1 + $0xb0] ss:$8 sps:$4 sm:$0xff]  }
 0x2f3   :  { %v1893_v33 = vsel %vm1877_vm9, %v1867_v21, %v1885_v26  ;;  %vm1875_vm11 = vcmp.gt.f32.partialorder %v1859_v10, 0.0  ;;  %v1883_v34 = vmul.f32 0.02, %v1859_v10  ;;  %v3769_v21 = vld [vmem:[%s4385_s1 + $0xa0] ss:$8 sps:$4 sm:$0xff]  }
 0x2f4   :  { %v3193_v35 = vpack.c.bf16 %v1893_v33, %v1892_v28  ;;  %v3773_v26 = vld [vmem:[%s4385_s1 + $0xc0] ss:$8 sps:$4 sm:$0xff]  }
 0x2f5   :  { %v1891_v37 = vsel %vm1875_vm11, %v1859_v10, %v1883_v34  ;;  %v3751_v41 = vld [vmem:[#allocation2 + $0x28] sm:$0xff]   ;;  %3619 = vmatprep.mubr.msk.bf16.mxu1 %vm2299_vm4, %v3773_v26 }
 0x2f6   :  { %3242 = vst [vmem:[#allocation2 + $0x38] sm:$0xff] %v3193_v35   ;;  %v3188_v39 = vpack.c.bf16 %v1891_v37, %v1890_v36 }
 0x2f7   :  { %v3752_v42 = vld [vmem:[#allocation2 + $0x20] sm:$0xff]  }
 0x2f8   :  { %3241 = vst [vmem:[#allocation2 + $0x30] sm:$0xff] %v3188_v39   ;;  %v2165_v39 = vpop.permute.xlu1 %2164 }
 0x2fd   :  { %v3749_v40 = vld [vmem:[#allocation2 + $0x38] sm:$0xff]  }
 0x2fe   :  { %2313 = vmatpush1.bf16.msra.mxu0 %v3749_v40 }
 0x2ff   :  { %2314 = vmatprep.subr.bf16.mxu0 %v3803_v2  ;;  %v3750_v30 = vld [vmem:[#allocation2 + $0x30] sm:$0xff]  }
 0x302   :  { %2315 = vmatpush1.bf16.msra.mxu0 %v3750_v30  ;;  %v2160_v30 = vpop.permute.xlu0 %2159 }
 0x303   :  { %2316 = vmatprep.subr.bf16.mxu0 %v3803_v2 }
 0x306   :  { %2317 = vmatpush1.bf16.msra.mxu0 %v3751_v41 }
 0x307   :  { %2318 = vmatprep.subr.bf16.mxu0 %v3803_v2 }
 0x30a   :  { %2319 = vmatpush1.bf16.msra.mxu0 %v3752_v42 }
 0x30b   :  { %2320 = vmatprep.subr.bf16.mxu0 %v3803_v2 }
 0x30e   :  { %2321 = vmatpush1.bf16.msra.mxu0 %v3753_v23  ;;  %v2155_v23 = vpop.permute.xlu1 %2154 }
 0x30f   :  { %2322 = vmatprep.subr.bf16.mxu0 %v3803_v2 }
 0x312   :  { %v3605_v45 = vpop.f32.mrf.mxu1  ;;  %2323 = vmatpush1.bf16.msra.mxu0 %v3754_v43 }
 0x313   :  { %v2025_v46 = vadd.f32 %v3605_v45, %v4290_v59  ;;  %2324 = vmatprep.subr.bf16.mxu0 %v3803_v2  ;;  %v2150_v45 = vpop.permute.xlu0 %2149 }
 0x314   :  { %v2016_v27 = vpop.f32.mrf.mxu1 }
 0x315   :  { %v2017_v48 = vadd.f32 %v2016_v27, %v4295_v63  ;;  %v2057_v49 = vmul.f32 0.02, %v2025_v46  ;;  %vm2049_vm12 = vcmp.gt.f32.partialorder %v2025_v46, 0.0  ;;  %v2145_v27 = vpop.permute.xlu1 %2144 }
 0x316   :  { %v3606_v24 = vpop.f32.mrf.mxu1  ;;  %2325 = vmatpush1.bf16.msra.mxu0 %v3755_v47 }
 0x317   :  { %v2028_v50 = vadd.f32 %v3606_v24, %v4292_v60  ;;  %2326 = vmatprep.subr.bf16.mxu0 %v3803_v2  ;;  %v2055_v52 = vmul.f32 0.02, %v2017_v48  ;;  %v2065_v59 = vsel %vm2049_vm12, %v2025_v46, %v2057_v49  ;;  %vm2047_vm14 = vcmp.gt.f32.partialorder %v2017_v48, 0.0 }
 0x318   :  { %v2019_v29 = vpop.f32.mrf.mxu1 }
 0x319   :  { %vm2050_vm13 = vcmp.gt.f32.partialorder %v2028_v50, 0.0  ;;  %v2058_v53 = vmul.f32 0.02, %v2028_v50  ;;  %v2020_v54 = vadd.f32 %v2019_v29, %v4299_v6  ;;  %v2063_v3 = vsel %vm2047_vm14, %v2017_v48, %v2055_v52 }
 0x31a   :  { %v3609_v61 = vpop.f32.mrf.mxu1  ;;  %2327 = vmatpush1.bf16.msra.mxu0 %v3756_v51  ;;  %v2140_v51 = vpop.permute.xlu0 %2139 }
 0x31b   :  { %v2066_v62 = vsel %vm2050_vm13, %v2028_v50, %v2058_v53  ;;  %vm2048_vm15 = vcmp.gt.f32.partialorder %v2020_v54, 0.0  ;;  %v2056_v63 = vmul.f32 0.02, %v2020_v54  ;;  %v2041_v0 = vadd.f32 %v3609_v61, %v4282_v55  ;;  %2336 = vmatprep.subr.bf16.mxu0 %v3803_v2 }
 0x31c   :  { %v3203_v60 = vpack.c.bf16 %v2066_v62, %v2065_v59  ;;  %v2032_v1 = vpop.f32.mrf.mxu1  ;;  %v2135_v62 = vpop.permute.xlu1 %2134 }
 0x31d   :  { %v2064_v4 = vsel %vm2048_vm15, %v2020_v54, %v2056_v63  ;;  %v2033_v5 = vadd.f32 %v2032_v1, %v4286_v57  ;;  %v2061_v31 = vmul.f32 0.02, %v2041_v0  ;;  %vm2053_vm1 = vcmp.gt.f32.partialorder %v2041_v0, 0.0 }
 0x31e   :  { %3244 = vst [vmem:[#allocation2 + $0x48] sm:$0xff] %v3203_v60   ;;  %v3198_v7 = vpack.c.bf16 %v2064_v4, %v2063_v3  ;;  %v3610_v6 = vpop.f32.mrf.mxu1 }
 0x31f   :  { %v2044_v11 = vadd.f32 %v3610_v6, %v4284_v56  ;;  %v2059_v12 = vmul.f32 0.02, %v2033_v5  ;;  %vm2051_vm3 = vcmp.gt.f32.partialorder %v2033_v5, 0.0  ;;  %v2069_v13 = vsel %vm2053_vm1, %v2041_v0, %v2061_v31  ;;  %v2130_v6 = vpop.permute.xlu0 %2129 }
 0x320   :  { %3243 = vst [vmem:[#allocation2 + $0x40] sm:$0xff] %v3198_v7   ;;  %v2035_v15 = vpop.f32.mrf.mxu1 }
 0x321   :  { %vm2054_vm2 = vcmp.gt.f32.partialorder %v2044_v11, 0.0  ;;  %v2062_v55 = vmul.f32 0.02, %v2044_v11  ;;  %v2036_v32 = vadd.f32 %v2035_v15, %v4288_v58  ;;  %v2067_v38 = vsel %vm2051_vm3, %v2033_v5, %v2059_v12 }
 0x323   :  { %v2070_v14 = vsel %vm2054_vm2, %v2044_v11, %v2062_v55  ;;  %vm2052_vm0 = vcmp.gt.f32.partialorder %v2036_v32, 0.0  ;;  %v2060_v16 = vmul.f32 0.02, %v2036_v32 }
 0x324   :  { %v3213_v57 = vpack.c.bf16 %v2070_v14, %v2069_v13 }
 0x325   :  { %v2068_v9 = vsel %vm2052_vm0, %v2036_v32, %v2060_v16  ;;  %v3759_v58 = vld [vmem:[#allocation2 + $0x48] sm:$0xff]  }
 0x326   :  { %3246 = vst [vmem:[#allocation2 + $0x58] sm:$0xff] %v3213_v57   ;;  %v3208_v17 = vpack.c.bf16 %v2068_v9, %v2067_v38 }
 0x327   :  { %v3760_v8 = vld [vmem:[#allocation2 + $0x40] sm:$0xff]  }
 0x328   :  { %3245 = vst [vmem:[#allocation2 + $0x50] sm:$0xff] %v3208_v17  }
 0x32d   :  { %v3757_v56 = vld [vmem:[#allocation2 + $0x58] sm:$0xff]  }
 0x32e   :  { %2337 = vmatpush2.bf16.msra.mxu0 %v3757_v56  ;;  %v3774_v56 = vld [vmem:[%s4385_s1 + $0xd0] ss:$8 sps:$4 sm:$0xff]  }
 0x32f   :  { %2338 = vmatprep.subr.bf16.mxu0 %v3803_v2  ;;  %v3758_v44 = vld [vmem:[#allocation2 + $0x50] sm:$0xff]  }
 0x332   :  { %2339 = vmatpush2.bf16.msra.mxu0 %v3758_v44  ;;  %v3775_v44 = vld [vmem:[%s4385_s1 + $0xe0] ss:$8 sps:$4 sm:$0xff]  }
 0x333   :  { %2340 = vmatprep.subr.bf16.mxu0 %v3803_v2 }
 0x336   :  { %2341 = vmatpush2.bf16.msra.mxu0 %v3759_v58  ;;  %v3776_v58 = vld [vmem:[%s4385_s1 + $0xf0] ss:$8 sps:$4 sm:$0xff]  }
 0x337   :  { %2342 = vmatprep.subr.bf16.mxu0 %v3803_v2  ;;  %v3767_v2 = vld [vmem:[%s4385_s1 + $0xa4] ss:$8 sps:$4 sm:$0xff]  }
 0x33a   :  { %2343 = vmatpush2.bf16.msra.mxu0 %v3760_v8  ;;  %v3777_v8 = vld [vmem:[%s4385_s1 + $0x100] ss:$8 sps:$4 sm:$0xff]  }
 0x33d   :  { %2345 = vmatmul.mubr.bf16.vlgmr.msra.gmra.mxu0 %v3761_v18  ;;  %v3778_v18 = vld [vmem:[%s4385_s1 + $0x120] ss:$8 sps:$4 sm:$0xff]  }
 0x33e   :  { %2972 = vmatprep.mubr.msk.bf16.mxu0 %vm2299_vm4, %v3764_v19  ;;  %v2459_v19 = vpop.permute.xlu1 %2458 }
 0x345   :  { %2353 = vmatmul.mubr.bf16.gmra.mxu0 %v3766_v20  ;;  %v2454_v20 = vpop.permute.xlu0 %2453 }
 0x346   :  { %2973 = vmatprep.mubr.msk.bf16.mxu0 %vm2299_vm4, %v3767_v2 }
 0x349   :  { %v2444_v26 = vpop.permute.xlu0 %2443 }
 0x34d   :  { %2361 = vmatmul.mubr.bf16.gmra.mxu0 %v3769_v21 }
 0x34e   :  { %2974 = vmatprep.mubr.msk.bf16.mxu0 %vm2299_vm4, %v3770_v22  ;;  %v2449_v22 = vpop.permute.xlu1 %2448 }
 0x355   :  { %2369 = vmatmul.mubr.bf16.gmra.mxu0 %v3772_v25 }
 0x356   :  { %3635 = vmatprep.mubr.msk.bf16.mxu0 %vm2299_vm4, %v3777_v8 }
 0x3fd   :  { %v2346_v10 = vpop.f32.mrf.mxu0 }
 0x3fe   :  { %v2347_v11 = vadd.f32 %v2346_v10, %v2130_v6  ;;  %v3780_v6 = vld [vmem:[%s4385_s1 + $0x130] ss:$8 sps:$4 sm:$0xff]  }
 0x3ff   :  { %v2348_v28 = vpop.f32.mrf.mxu0 }
 0x400   :  { %v2385_v14 = vmul.f32 0.02, %v2347_v11  ;;  %vm2377_vm12 = vcmp.gt.f32.partialorder %v2347_v11, 0.0 }
 0x401   :  { %v2349_v33 = vpop.f32.mrf.mxu0 }
 0x402   :  { %v2350_v1 = vadd.f32 %v2349_v33, %v2135_v62  ;;  %v2393_v9 = vsel %vm2377_vm12, %v2347_v11, %v2385_v14  ;;  %v2439_v33 = vpop.permute.xlu1 %2438 }
 0x403   :  { %v2351_v34 = vpop.f32.mrf.mxu0 }
 0x404   :  { %v2386_v32 = vmul.f32 0.02, %v2350_v1  ;;  %vm2378_vm11 = vcmp.gt.f32.partialorder %v2350_v1, 0.0 }
 0x405   :  { %v2354_v35 = vpop.f32.mrf.mxu0 }
 0x406   :  { %v2355_v63 = vadd.f32 %v2354_v35, %v2140_v51  ;;  %v2394_v38 = vsel %vm2378_vm11, %v2350_v1, %v2386_v32 }
 0x407   :  { %v2356_v36 = vpop.f32.mrf.mxu0  ;;  %v2401_v17 = vpack.c.bf16 %v2394_v38, %v2393_v9 }
 0x408   :  { %v2387_v15 = vmul.f32 0.02, %v2355_v63  ;;  %vm2379_vm10 = vcmp.gt.f32.partialorder %v2355_v63, 0.0 }
 0x409   :  { %v2357_v37 = vpop.f32.mrf.mxu0 }
 0x40a   :  { %v2358_v52 = vadd.f32 %v2357_v37, %v2145_v27  ;;  %v2395_v16 = vsel %vm2379_vm10, %v2355_v63, %v2387_v15  ;;  %v2434_v37 = vpop.permute.xlu0 %2433 }
 0x40b   :  { %v2359_v40 = vpop.f32.mrf.mxu0 }
 0x40c   :  { %v2388_v3 = vmul.f32 0.02, %v2358_v52  ;;  %vm2380_vm9 = vcmp.gt.f32.partialorder %v2358_v52, 0.0 }
 0x40d   :  { %v2362_v41 = vpop.f32.mrf.mxu0 }
 0x40e   :  { %v2363_v50 = vadd.f32 %v2362_v41, %v2150_v45  ;;  %v2396_v13 = vsel %vm2380_vm9, %v2358_v52, %v2388_v3  ;;  %v2424_v51 = vpop.permute.xlu0 %2423 }
 0x40f   :  { %v2364_v42 = vpop.f32.mrf.mxu0  ;;  %v2402_v57 = vpack.c.bf16 %v2396_v13, %v2395_v16 }
 0x410   :  { %v2389_v0 = vmul.f32 0.02, %v2363_v50  ;;  %vm2381_vm8 = vcmp.gt.f32.partialorder %v2363_v50, 0.0 }
 0x411   :  { %v2365_v43 = vpop.f32.mrf.mxu0 }
 0x412   :  { %v2366_v48 = vadd.f32 %v2365_v43, %v2155_v23  ;;  %v2397_v12 = vsel %vm2381_vm8, %v2363_v50, %v2389_v0  ;;  %v2429_v43 = vpop.permute.xlu1 %2428 }
 0x413   :  { %v2367_v46 = vpop.f32.mrf.mxu0 }
 0x414   :  { %v2390_v53 = vmul.f32 0.02, %v2366_v48  ;;  %vm2382_vm5 = vcmp.gt.f32.partialorder %v2366_v48, 0.0 }
 0x415   :  { %v2370_v47 = vpop.f32.mrf.mxu0 }
 0x416   :  { %v2371_v49 = vadd.f32 %v2370_v47, %v2160_v30  ;;  %v2398_v7 = vsel %vm2382_vm5, %v2366_v48, %v2390_v53  ;;  %v2610_v11 = vpop.permute.xlu1 %2609 }
 0x417   :  { %v2372_v24 = vpop.f32.mrf.mxu0  ;;  %v2403_v55 = vpack.c.bf16 %v2398_v7, %v2397_v12  ;;  %v3779_v7 = vld [vmem:[%s4385_s1 + $0x110] ss:$8 sps:$4 sm:$0xff]   ;;  %s3804_s1 = smov [#allocation4]  }
 0x418   :  { %v2391_v54 = vmul.f32 0.02, %v2371_v49  ;;  %vm2383_vm6 = vcmp.gt.f32.partialorder %v2371_v49, 0.0  ;;  %s2752_s16 = sshll.u32 %s3804_s1, 4  ;;  %s2753_s16 = int_to_ptr.vmem [resolvable:$true] %s2752_s16 }
 0x419   :  { %v2373_v29 = vpop.f32.mrf.mxu0  ;;  %s3781_s17 = scalar_lea.vmem %s2753_s16, 1024  ;;  %p3786_p1 = scmp.lt.s32.totalorder %s2753_s16, %s2753_s16 }
 0x41a   :  { %v2374_v59 = vadd.f32 %v2373_v29, %v2165_v39  ;;  %v2399_v4 = vsel %vm2383_vm6, %v2371_v49, %v2391_v54  ;;  %v2620_v12 = vpop.permute.xlu1 %2619  ;;  %p3782_p0 = scmp.ne.s32.totalorder %s2753_s16, %s3781_s17  ;;  %p3787_p2 = scmp.lt.s32.totalorder %s3781_s17, %s3781_s17 }
 0x41b   :  { %v2375_v61 = vpop.f32.mrf.mxu0 }
 0x41c   :  { %vm2384_vm7 = vcmp.gt.f32.partialorder %v2374_v59, 0.0  ;;  %v2392_v60 = vmul.f32 0.02, %v2374_v59  ;;  %p3788_p3 = por %p3787_p2, %p3786_p1 }
 0x41e   :  { %v2400_v5 = vsel %vm2384_vm7, %v2374_v59, %v2392_v60  ;;  %v2630_v32 = vpop.permute.xlu1 %2629  ;;  %p3789_p4 = pnand %p3788_p3, %p3782_p0 }
 0x41f   :  { %v2404_v31 = vpack.c.bf16 %v2400_v5, %v2399_v4 }
 0x421   :  { %3611 = vmatprep.subr.bf16.mxu1 %v2404_v31 }
 0x422   :  { %3612 = vmatpush3.bf16.msra.mxu1 %v2404_v31  ;;  %v2605_v31 = vpop.permute.xlu0 %2604 }
 0x423   :  { %3613 = vmatprep.subr.bf16.mxu1 %v2403_v55 }
 0x426   :  { %3614 = vmatpush3.bf16.msra.mxu1 %v2403_v55  ;;  %v2615_v15 = vpop.permute.xlu0 %2614 }
 0x427   :  { %3615 = vmatprep.subr.bf16.mxu1 %v2402_v57 }
 0x42a   :  { %3616 = vmatpush3.bf16.msra.mxu1 %v2402_v57  ;;  %v2625_v55 = vpop.permute.xlu0 %2624 }
 0x42b   :  { %3617 = vmatprep.subr.bf16.mxu1 %v2401_v17 }
 0x42e   :  { %3618 = vmatpush3.bf16.msra.mxu1 %v2401_v17  ;;  %v2635_v13 = vpop.permute.xlu0 %2634 }
 0x431   :  { %3620 = vmatmul.mubr.msk.bf16.vlgmr.msra.gmra.mxu1 %vm2299_vm4, %v3774_v56  ;;  %v2640_v56 = vpop.permute.xlu1 %2639 }
 0x432   :  { %3623 = vmatprep.mubr.msk.bf16.mxu1 %vm2299_vm4, %v3775_v44 }
 0x439   :  { %3624 = vmatmul.mubr.msk.bf16.gmra.mxu1 %vm2299_vm4, %v3776_v58 }
 0x43a   :  { %3639 = vmatprep.mubr.msk.bf16.mxu1 %vm2299_vm4, %v3778_v18 }
 0x4f1   :  { %v3621_v2 = vpop.f32.mrf.mxu1 }
 0x4f2   :  { %v2536_v42 = vadd.f32 %v3621_v2, %v2434_v37 }
 0x4f3   :  { %v2527_v21 = vpop.f32.mrf.mxu1 }
 0x4f4   :  { %v2568_v52 = vmul.f32 0.02, %v2536_v42  ;;  %v2528_v53 = vadd.f32 %v2527_v21, %v2424_v51  ;;  %vm2560_vm3 = vcmp.gt.f32.partialorder %v2536_v42, 0.0 }
 0x4f5   :  { %v3622_v25 = vpop.f32.mrf.mxu1 }
 0x4f6   :  { %v2539_v39 = vadd.f32 %v3622_v25, %v2439_v33  ;;  %v2576_v0 = vsel %vm2560_vm3, %v2536_v42, %v2568_v52  ;;  %v2566_v60 = vmul.f32 0.02, %v2528_v53  ;;  %vm2558_vm5 = vcmp.gt.f32.partialorder %v2528_v53, 0.0 }
 0x4f7   :  { %v2530_v10 = vpop.f32.mrf.mxu1 }
 0x4f8   :  { %v2569_v27 = vmul.f32 0.02, %v2539_v39  ;;  %v2531_v48 = vadd.f32 %v2530_v10, %v2429_v43  ;;  %vm2561_vm2 = vcmp.gt.f32.partialorder %v2539_v39, 0.0  ;;  %v2574_v4 = vsel %vm2558_vm5, %v2528_v53, %v2566_v60 }
 0x4f9   :  { %v3625_v28 = vpop.f32.mrf.mxu1 }
 0x4fa   :  { %v2552_v34 = vadd.f32 %v3625_v28, %v2454_v20  ;;  %v2577_v62 = vsel %vm2561_vm2, %v2539_v39, %v2569_v27  ;;  %v2567_v63 = vmul.f32 0.02, %v2531_v48  ;;  %vm2559_vm0 = vcmp.gt.f32.partialorder %v2531_v48, 0.0 }
 0x4fb   :  { %v2543_v35 = vpop.f32.mrf.mxu1  ;;  %v2583_v1 = vpack.c.bf16 %v2577_v62, %v2576_v0 }
 0x4fc   :  { %v2544_v36 = vadd.f32 %v2543_v35, %v2444_v26  ;;  %v2572_v30 = vmul.f32 0.02, %v2552_v34  ;;  %vm2564_vm13 = vcmp.gt.f32.partialorder %v2552_v34, 0.0  ;;  %v2575_v3 = vsel %vm2559_vm0, %v2531_v48, %v2567_v63 }
 0x4fd   :  { %v3626_v40 = vpop.f32.mrf.mxu1  ;;  %v2582_v5 = vpack.c.bf16 %v2575_v3, %v2574_v4 }
 0x4fe   :  { %v2555_v41 = vadd.f32 %v3626_v40, %v2459_v19  ;;  %v2570_v45 = vmul.f32 0.02, %v2544_v36  ;;  %vm2562_vm15 = vcmp.gt.f32.partialorder %v2544_v36, 0.0  ;;  %v2580_v49 = vsel %vm2564_vm13, %v2552_v34, %v2572_v30 }
 0x4ff   :  { %v2546_v23 = vpop.f32.mrf.mxu1 }
 0x500   :  { %vm2565_vm14 = vcmp.gt.f32.partialorder %v2555_v41, 0.0  ;;  %v2573_v46 = vmul.f32 0.02, %v2555_v41  ;;  %v2547_v47 = vadd.f32 %v2546_v23, %v2449_v22  ;;  %v2578_v54 = vsel %vm2562_vm15, %v2544_v36, %v2570_v45 }
 0x502   :  { %v2581_v24 = vsel %vm2565_vm14, %v2555_v41, %v2573_v46  ;;  %vm2563_vm1 = vcmp.gt.f32.partialorder %v2547_v47, 0.0  ;;  %v2571_v50 = vmul.f32 0.02, %v2547_v47 }
 0x503   :  { %v2585_v29 = vpack.c.bf16 %v2581_v24, %v2580_v49 }
 0x504   :  { %v2579_v59 = vsel %vm2563_vm1, %v2547_v47, %v2571_v50 }
 0x505   :  { %v2584_v61 = vpack.c.bf16 %v2579_v59, %v2578_v54  ;;  %3627 = vmatprep.subr.bf16.mxu0 %v2585_v29  ;;  %3643 = vmatprep.subr.bf16.mxu1 %v2585_v29 }
 0x506   :  { %3628 = vmatpush3.bf16.msra.mxu0 %v2585_v29  ;;  %3647 = vmatpush3.bf16.msra.mxu1 %v2585_v29 }
 0x507   :  { %3629 = vmatprep.subr.bf16.mxu0 %v2584_v61  ;;  %3644 = vmatprep.subr.bf16.mxu1 %v2584_v61 }
 0x50a   :  { %3630 = vmatpush3.bf16.msra.mxu0 %v2584_v61  ;;  %3648 = vmatpush3.bf16.msra.mxu1 %v2584_v61 }
 0x50b   :  { %3631 = vmatprep.subr.bf16.mxu0 %v2583_v1  ;;  %3645 = vmatprep.subr.bf16.mxu1 %v2583_v1 }
 0x50e   :  { %3632 = vmatpush3.bf16.msra.mxu0 %v2583_v1  ;;  %3649 = vmatpush3.bf16.msra.mxu1 %v2583_v1 }
 0x50f   :  { %3633 = vmatprep.subr.bf16.mxu0 %v2582_v5  ;;  %3646 = vmatprep.subr.bf16.mxu1 %v2582_v5 }
 0x512   :  { %3634 = vmatpush3.bf16.msra.mxu0 %v2582_v5  ;;  %3650 = vmatpush3.bf16.msra.mxu1 %v2582_v5 }
 0x515   :  { %3636 = vmatmul.mubr.msk.bf16.vlgmr.msra.gmra.mxu0 %vm2299_vm4, %v3779_v7  ;;  %3640 = vmatmul.mubr.msk.bf16.vlgmr.msra.gmra.mxu1 %vm2299_vm4, %v3780_v6 }
 0x5d5   :  { %v3637_v14 = vpop.f32.mrf.mxu0  ;;  %v3641_v16 = vpop.f32.mrf.mxu1 }
 0x5d6   :  { %v2717_v57 = vadd.f32 %v3637_v14, %v2615_v15  ;;  %v2733_v38 = vadd.f32 %v3641_v16, %v2635_v13 }
 0x5d7   :  { %v2708_v9 = vpop.f32.mrf.mxu0  ;;  %v2724_v17 = vpop.f32.mrf.mxu1 }
 0x5d8   :  { %2741 = vst [vmem:[#allocation4 + $0x10] sm:$0xff] %v2717_v57  ;;  %2745 = vst [vmem:[#allocation4 + $0x30] sm:$0xff] %v2733_v38  ;;  %v2709_v44 = vadd.f32 %v2708_v9, %v2605_v31  ;;  %v2725_v58 = vadd.f32 %v2724_v17, %v2625_v55 }
 0x5d9   :  { %v3638_v8 = vpop.f32.mrf.mxu0  ;;  %v3642_v18 = vpop.f32.mrf.mxu1 }
 0x5da   :  { %2739 = vst [vmem:[#allocation4] sm:$0xff] %v2709_v44  ;;  %2743 = vst [vmem:[#allocation4 + $0x20] sm:$0xff] %v2725_v58  ;;  %v2720_v19 = vadd.f32 %v3638_v8, %v2620_v12  ;;  %v2736_v20 = vadd.f32 %v3642_v18, %v2640_v56 }
 0x5db   :  { %v2711_v2 = vpop.f32.mrf.mxu0  ;;  %v2727_v21 = vpop.f32.mrf.mxu1 }
 0x5dc   :  { %2742 = vst [vmem:[#allocation4 + $0x18] sm:$0xff] %v2720_v19  ;;  %2746 = vst [vmem:[#allocation4 + $0x38] sm:$0xff] %v2736_v20  ;;  %v2712_v22 = vadd.f32 %v2711_v2, %v2610_v11  ;;  %v2728_v25 = vadd.f32 %v2727_v21, %v2630_v32 }
 0x5de   :  { %2740 = vst [vmem:[#allocation4 + $0x8] sm:$0xff] %v2712_v22  ;;  %2744 = vst [vmem:[#allocation4 + $0x28] sm:$0xff] %v2728_v25 }
 0x5df   :  { %3792 = shalt.err (!%p3789_p4)
}
 0x5e0   :  { %s3805_s18 = smov 128   ;;  %s3806_s19 = smov 8  }
 0x5e1   :  { %2758 = dma.vmem_to_hbm [thread:$0]  %s2753_s16, 1024, %s4387_s3, [#allocation5], %s3805_s18, %s3805_s18, %s3806_s19  }
 0x5e2   :  { %3801 = dma.done.wait [#allocation5], 1024  }
 0x5e3   :  { %3802 = vsyncadd [#allocation5], 4294966272 }
 0x5e4   :  { %2762 = vsyncpa [#allocation5], 1 }

</bundles_post_ra>
